<compile_context>
chip_gen: v7x
topology: tpu7x:2x2x1
jax: 0.10.0
libtpu: 0.0.40
codegen_flags: <defaults>
</compile_context>

<pallas_src>
import functools

import jax
import jax.numpy as jnp
from jax.experimental import pallas as pl
from jax.experimental.pallas import tpu as pltpu

EPS = 1e-5


# ----------------------------- Pallas kernel ------------------------------- #

def _trunk_head_kernel(apply_trans, relu_last, log_softmax,
                       x_ref, trans_ref,
                       w1_ref, t1_ref, w2_ref, t2_ref, w3_ref, t3_ref,
                       hw1_ref, ht1_ref, hw2_ref, ht2_ref, hw3_ref, hb3_ref,
                       out_ref, acc_ref):
    """Point MLP (3 folded conv+BN layers) + running max + fused FC head.

    Grid = (B, N_tiles).  x_ref: (1, TN, Cin); trans_ref: (1, 3, 3);
    out_ref: (1, 1, out_dim); acc_ref: (1, 1024) f32 scratch (running max).
    """
    n = pl.program_id(1)

    @pl.when(n == 0)
    def _init():
        # -inf (not 0): the feat trunk has no ReLU after bn3, outputs can be <0.
        acc_ref[...] = jnp.full(acc_ref.shape, -jnp.inf, dtype=acc_ref.dtype)

    # ---- per-point MLP on this tile (bf16 matmuls, f32 epilogue) ----
    h = x_ref[0].astype(jnp.bfloat16)                        # (TN, Cin)
    w1 = w1_ref[...]                                         # (Cin, 128) bf16
    if apply_trans:
        # Fold the 3x3 input transform into layer 1: x @ T @ W1 == x @ (T @ W1).
        w1 = jnp.dot(trans_ref[0].astype(jnp.bfloat16), w1,
                     preferred_element_type=jnp.float32).astype(jnp.bfloat16)
    h = jnp.dot(h, w1, preferred_element_type=jnp.float32) + t1_ref[...]
    h = jnp.maximum(h, 0.0)
    h = jnp.dot(h.astype(jnp.bfloat16), w2_ref[...],
                preferred_element_type=jnp.float32) + t2_ref[...]
    h = jnp.maximum(h, 0.0)
    h = jnp.dot(h.astype(jnp.bfloat16), w3_ref[...],
                preferred_element_type=jnp.float32) + t3_ref[...]
    if relu_last:
        h = jnp.maximum(h, 0.0)

    # Running max over points; accumulator stays resident across the N axis.
    acc_ref[...] = jnp.maximum(acc_ref[...], jnp.max(h, axis=0, keepdims=True))

    # ---- FC head fused into the epilogue of the last point tile ----
    @pl.when(n == pl.num_programs(1) - 1)
    def _head():
        g = acc_ref[...]                                     # (1, 1024) f32
        g = jnp.maximum(
            jnp.dot(g.astype(jnp.bfloat16), hw1_ref[...],
                    preferred_element_type=jnp.float32) + ht1_ref[...], 0.0)
        g = jnp.maximum(
            jnp.dot(g.astype(jnp.bfloat16), hw2_ref[...],
                    preferred_element_type=jnp.float32) + ht2_ref[...], 0.0)
        g = jnp.dot(g.astype(jnp.bfloat16), hw3_ref[...],
                    preferred_element_type=jnp.float32) + hb3_ref[...]
        if log_softmax:
            m = jnp.max(g, axis=1, keepdims=True)
            g = g - (m + jnp.log(jnp.sum(jnp.exp(g - m), axis=1, keepdims=True)))
        out_ref[...] = g.reshape(out_ref.shape)


# ------------------------------ pallas_call glue ---------------------------- #

def _round_up(v, m):
    return (v + m - 1) // m * m


def _const_spec(arr):
    nd = arr.ndim
    return pl.BlockSpec(arr.shape, lambda b, n, _nd=nd: (0,) * _nd)


def _run_trunk_head(tp, hp, x, trans, *, apply_trans, relu_last,
                    log_softmax, tile_n):
    B, n_pad, cin = x.shape
    n_tiles = n_pad // tile_n
    out_dim = hp['b3'].shape[-1]

    weight_args = [tp['w1'], tp['t1'], tp['w2'], tp['t2'], tp['w3'], tp['t3'],
                   hp['w1'], hp['t1'], hp['w2'], hp['t2'], hp['w3'], hp['b3']]

    in_specs = (
        [pl.BlockSpec((1, tile_n, cin), lambda b, n: (b, n, 0)),   # x tile
         pl.BlockSpec((1, 3, 3), lambda b, n: (b, 0, 0))]          # 3x3 trans
        + [_const_spec(a) for a in weight_args]                    # resident
    )

    kernel = functools.partial(_trunk_head_kernel,
                               apply_trans, relu_last, log_softmax)

    return pl.pallas_call(
        kernel,
        grid=(B, n_tiles),
        in_specs=in_specs,
        out_specs=pl.BlockSpec((1, 1, out_dim), lambda b, n: (b, 0, 0)),
        out_shape=jax.ShapeDtypeStruct((B, 1, out_dim), jnp.float32),
        scratch_shapes=[pltpu.VMEM((1, 1024), jnp.float32)],
        compiler_params=pltpu.CompilerParams(
            dimension_semantics=("parallel", "arbitrary")),
    )(x, trans, *weight_args)


# ------------------------------ parameters ---------------------------------- #

def _dense(key, cin, cout, scale=0.05):
    kw, kb = jax.random.split(key)
    w = scale * jax.random.normal(kw, (cin, cout), jnp.float32)
    b = scale * jax.random.normal(kb, (cout,), jnp.float32)
    return w, b


def _bn_params(key, c):
    k1, k2, k3, k4 = jax.random.split(key, 4)
    gamma = 1.0 + 0.1 * jax.random.normal(k1, (c,), jnp.float32)
    beta = 0.1 * jax.random.normal(k2, (c,), jnp.float32)
    mean = 0.1 * jax.random.normal(k3, (c,), jnp.float32)
    var = 0.5 + jnp.abs(jax.random.normal(k4, (c,), jnp.float32))
    return gamma, beta, mean, var


def _dense_bn_folded(key, cin, cout):
    """Linear + BatchNorm (running stats) folded into bf16 weight + f32 bias."""
    k1, k2 = jax.random.split(key)
    w, b = _dense(k1, cin, cout)
    gamma, beta, mean, var = _bn_params(k2, cout)
    scale = gamma / jnp.sqrt(var + EPS)
    w_eff = (w * scale[None, :]).astype(jnp.bfloat16)
    t_eff = ((b - mean) * scale + beta).reshape(1, -1).astype(jnp.float32)
    return w_eff, t_eff


def _trunk_params(key, cin):
    k1, k2, k3 = jax.random.split(key, 3)
    w1, t1 = _dense_bn_folded(k1, cin, 64)
    # Pad layer-1 outputs 64 -> 128 (lane-dense activations); padded channels
    # produce relu(0 + 0) = 0 and hit zero rows of w2, so numerics are exact.
    w1 = jnp.pad(w1, ((0, 0), (0, 64)))
    t1 = jnp.pad(t1, ((0, 0), (0, 64)))
    w2, t2 = _dense_bn_folded(k2, 64, 128)
    w2 = jnp.pad(w2, ((0, 64), (0, 0)))
    w3, t3 = _dense_bn_folded(k3, 128, 1024)
    return dict(w1=w1, t1=t1, w2=w2, t2=t2, w3=w3, t3=t3)


def _head_params(key, out_dim):
    k1, k2, k3 = jax.random.split(key, 3)
    w1, t1 = _dense_bn_folded(k1, 1024, 512)
    w2, t2 = _dense_bn_folded(k2, 512, 256)
    w3, b3 = _dense(k3, 256, out_dim)
    return dict(w1=w1, t1=t1, w2=w2, t2=t2,
                w3=w3.astype(jnp.bfloat16),
                b3=b3.reshape(1, -1).astype(jnp.float32))


def init_params(key, k=2):
    k1, k2, k3, k4 = jax.random.split(key, 4)
    return dict(
        stn_trunk=_trunk_params(k1, 3),   # STN3d conv1..3 + bn1..3
        stn_head=_head_params(k2, 9),     # STN3d fc1..3 + bn4..5
        feat_trunk=_trunk_params(k3, 3),  # PointNetfeat conv1..3 + bn1..3
        cls_head=_head_params(k4, k),     # PointNetCls fc1..3 + bn1..2
    )


# ------------------------------ forward pass -------------------------------- #

def pointnet_cls_forward(params, x, tile_n=512):
    """x: (B, 3, N) (PyTorch NCW) or (B, N, 3). Returns (log_softmax, trans, None)."""
    # Single layout conversion to kernel layout (B, N, 3); no double transpose.
    if x.shape[-1] != 3:
        x = jnp.transpose(x, (0, 2, 1))
    x = x.astype(jnp.float32)
    B, N, cin = x.shape

    # Point-tile size: multiple of 8 sublanes, capped by the (padded) N.
    tn = min(_round_up(int(tile_n), 8), _round_up(N, 8))
    n_pad = _round_up(N, tn)
    if n_pad > N:
        # Pad with copies of the first point: identical MLP outputs, so the
        # global max-pool is unchanged (keeps the tiled kernel exact).
        pad = jnp.broadcast_to(x[:, :1, :], (B, n_pad - N, cin))
        x = jnp.concatenate([x, pad], axis=1)

    eye3 = jnp.eye(3, dtype=jnp.float32)

    # --- STN3d: point MLP (ReLU on all 3 layers) + max + FC head, then +I3 ---
    t9 = _run_trunk_head(params['stn_trunk'], params['stn_head'], x,
                         jnp.broadcast_to(eye3, (B, 3, 3)),
                         apply_trans=False, relu_last=True,
                         log_softmax=False, tile_n=tn)            # (B, 1, 9)
    trans = t9.reshape(B, 3, 3) + eye3[None]

    # --- PointNetfeat + classifier: bmm(x, trans) folded into conv1,
    #     no ReLU after bn3, global max, FC head (Dropout=id) + log_softmax ---
    logprob = _run_trunk_head(params['feat_trunk'], params['cls_head'], x,
                              trans,
                              apply_trans=True, relu_last=False,
                              log_softmax=True, tile_n=tn)        # (B, 1, k)
    logprob = logprob.reshape(B, -1)

    trans_feat = None  # feature_transform=False
    return logprob, trans, trans_feat


# ---------------------------------- main ------------------------------------ #

if __name__ == "__main__":
    B, N, k = 2, 16, 2
    root = jax.random.PRNGKey(0)
    k_params, k_input = jax.random.split(root)
    params = init_params(k_params, k=k)
    x = jax.random.normal(k_input, (B, 3, N), jnp.float32)   # (B, C=3, N) like PyTorch

    # tile_n=8 -> two point tiles per batch element: exercises the resident
    # running-max accumulator and the fused FC-head epilogue.
    logprob, trans, trans_feat = pointnet_cls_forward(params, x, tile_n=8)
    jax.block_until_ready((logprob, trans))

    assert logprob.shape == (B, k)
    assert trans.shape == (B, 3, 3)
    assert trans_feat is None
    assert bool(jnp.all(jnp.isfinite(logprob))) and bool(jnp.all(jnp.isfinite(trans)))
    # log_softmax rows should exponentiate to ~1
    assert bool(jnp.allclose(jnp.sum(jnp.exp(logprob), axis=1), 1.0, atol=1e-4))
    print("KERNEL_OK")
</pallas_src>

<mosaic_0001>
module attributes {stable_mosaic.version = 11 : i64} {
  func.func @_trunk_head_kernel(%arg0: i32, %arg1: i32, %arg2: memref<1x8x3xf32, #tpu.memory_space<vmem>>, %arg3: memref<1x3x3xf32, #tpu.memory_space<vmem>>, %arg4: memref<3x128xbf16, #tpu.memory_space<vmem>>, %arg5: memref<1x128xf32, #tpu.memory_space<vmem>>, %arg6: memref<128x128xbf16, #tpu.memory_space<vmem>>, %arg7: memref<1x128xf32, #tpu.memory_space<vmem>>, %arg8: memref<128x1024xbf16, #tpu.memory_space<vmem>>, %arg9: memref<1x1024xf32, #tpu.memory_space<vmem>>, %arg10: memref<1024x512xbf16, #tpu.memory_space<vmem>>, %arg11: memref<1x512xf32, #tpu.memory_space<vmem>>, %arg12: memref<512x256xbf16, #tpu.memory_space<vmem>>, %arg13: memref<1x256xf32, #tpu.memory_space<vmem>>, %arg14: memref<256x9xbf16, #tpu.memory_space<vmem>>, %arg15: memref<1x9xf32, #tpu.memory_space<vmem>>, %arg16: memref<1x1x9xf32, #tpu.memory_space<vmem>>, %arg17: memref<1x1024xf32, #tpu.memory_space<vmem>>) attributes {dimension_semantics = [#tpu.dimension_semantics<parallel>, #tpu.dimension_semantics<arbitrary>], iteration_bounds = array<i64: 2, 2>, scalar_prefetch = 0 : i64, scratch_operands = 1 : i64, tpu.core_type = #tpu.core_type<tc>, window_params = [{transform_indices = @transform_0, window_bounds = array<i64: 1, 8, 3>}, {transform_indices = @transform_1, window_bounds = array<i64: 1, 3, 3>}, {pipeline_mode = #tpu.pipeline_mode<synchronous>, transform_indices = @transform_2, window_bounds = array<i64: 3, 128>}, {pipeline_mode = #tpu.pipeline_mode<synchronous>, transform_indices = @transform_3, window_bounds = array<i64: 1, 128>}, {pipeline_mode = #tpu.pipeline_mode<synchronous>, transform_indices = @transform_4, window_bounds = array<i64: 128, 128>}, {pipeline_mode = #tpu.pipeline_mode<synchronous>, transform_indices = @transform_5, window_bounds = array<i64: 1, 128>}, {pipeline_mode = #tpu.pipeline_mode<synchronous>, transform_indices = @transform_6, window_bounds = array<i64: 128, 1024>}, {pipeline_mode = #tpu.pipeline_mode<synchronous>, transform_indices = @transform_7, window_bounds = array<i64: 1, 1024>}, {pipeline_mode = #tpu.pipeline_mode<synchronous>, transform_indices = @transform_8, window_bounds = array<i64: 1024, 512>}, {pipeline_mode = #tpu.pipeline_mode<synchronous>, transform_indices = @transform_9, window_bounds = array<i64: 1, 512>}, {pipeline_mode = #tpu.pipeline_mode<synchronous>, transform_indices = @transform_10, window_bounds = array<i64: 512, 256>}, {pipeline_mode = #tpu.pipeline_mode<synchronous>, transform_indices = @transform_11, window_bounds = array<i64: 1, 256>}, {pipeline_mode = #tpu.pipeline_mode<synchronous>, transform_indices = @transform_12, window_bounds = array<i64: 256, 9>}, {pipeline_mode = #tpu.pipeline_mode<synchronous>, transform_indices = @transform_13, window_bounds = array<i64: 1, 9>}, {transform_indices = @transform_14, window_bounds = array<i64: 1, 1, 9>}]} {
    %c0_i32 = arith.constant 0 : i32
    %0 = arith.cmpi eq, %arg1, %c0_i32 : i32
    %1 = arith.extui %0 : i1 to i32
    %c0_i32_0 = arith.constant 0 : i32
    %2 = arith.cmpi ne, %1, %c0_i32_0 : i32
    scf.if %2 {
      %cst_26 = arith.constant 0xFF800000 : f32
      %37 = vector.broadcast %cst_26 : f32 to vector<1x1024xf32>
      %c0_27 = arith.constant 0 : index
      %c0_28 = arith.constant 0 : index
      %38 = vector.load %arg17[%c0_27, %c0_28] : memref<1x1024xf32, #tpu.memory_space<vmem>>, vector<1x1024xf32>
      tpu.vector_store %arg17[%c0_27, %c0_28], %37 {strides = array<i32>} : memref<1x1024xf32, #tpu.memory_space<vmem>>, vector<1x1024xf32>,
    } else {
    }
    %c0 = arith.constant 0 : index
    %c0_1 = arith.constant 0 : index
    %c0_2 = arith.constant 0 : index
    %3 = vector.load %arg2[%c0, %c0_1, %c0_2] : memref<1x8x3xf32, #tpu.memory_space<vmem>>, vector<1x8x3xf32>
    %4 = vector.shape_cast %3 : vector<1x8x3xf32> to vector<8x3xf32>
    %5 = arith.truncf %4 : vector<8x3xf32> to vector<8x3xbf16>
    %c0_3 = arith.constant 0 : index
    %c0_4 = arith.constant 0 : index
    %6 = vector.load %arg4[%c0_3, %c0_4] : memref<3x128xbf16, #tpu.memory_space<vmem>>, vector<3x128xbf16>
    %cst = arith.constant dense<0.000000e+00> : vector<8x128xf32>
    %7 = tpu.matmul %5, %6, %cst {dimension_numbers = #tpu.dot_dimension_numbers<[1], [0], [0], [1], [0, 0, 1, 1], [], []>} : vector<8x3xbf16>, vector<3x128xbf16>, vector<8x128xf32> -> vector<8x128xf32>
    %c0_5 = arith.constant 0 : index
    %c0_6 = arith.constant 0 : index
    %8 = vector.load %arg5[%c0_5, %c0_6] : memref<1x128xf32, #tpu.memory_space<vmem>>, vector<1x128xf32>
    %9 = vector.broadcast %8 : vector<1x128xf32> to vector<8x128xf32>
    %10 = arith.addf %7, %9 : vector<8x128xf32>
    %cst_7 = arith.constant 0.000000e+00 : f32
    %11 = vector.broadcast %cst_7 : f32 to vector<8x128xf32>
    %12 = arith.maximumf %10, %11 : vector<8x128xf32>
    %13 = arith.truncf %12 : vector<8x128xf32> to vector<8x128xbf16>
    %c0_8 = arith.constant 0 : index
    %c0_9 = arith.constant 0 : index
    %14 = vector.load %arg6[%c0_8, %c0_9] : memref<128x128xbf16, #tpu.memory_space<vmem>>, vector<128x128xbf16>
    %cst_10 = arith.constant dense<0.000000e+00> : vector<8x128xf32>
    %15 = tpu.matmul %13, %14, %cst_10 {dimension_numbers = #tpu.dot_dimension_numbers<[1], [0], [0], [1], [0, 0, 1, 1], [], []>} : vector<8x128xbf16>, vector<128x128xbf16>, vector<8x128xf32> -> vector<8x128xf32>
    %c0_11 = arith.constant 0 : index
    %c0_12 = arith.constant 0 : index
    %16 = vector.load %arg7[%c0_11, %c0_12] : memref<1x128xf32, #tpu.memory_space<vmem>>, vector<1x128xf32>
    %17 = vector.broadcast %16 : vector<1x128xf32> to vector<8x128xf32>
    %18 = arith.addf %15, %17 : vector<8x128xf32>
    %cst_13 = arith.constant 0.000000e+00 : f32
    %19 = vector.broadcast %cst_13 : f32 to vector<8x128xf32>
    %20 = arith.maximumf %18, %19 : vector<8x128xf32>
    %21 = arith.truncf %20 : vector<8x128xf32> to vector<8x128xbf16>
    %c0_14 = arith.constant 0 : index
    %c0_15 = arith.constant 0 : index
    %22 = vector.load %arg8[%c0_14, %c0_15] : memref<128x1024xbf16, #tpu.memory_space<vmem>>, vector<128x1024xbf16>
    %cst_16 = arith.constant dense<0.000000e+00> : vector<8x1024xf32>
    %23 = tpu.matmul %21, %22, %cst_16 {dimension_numbers = #tpu.dot_dimension_numbers<[1], [0], [0], [1], [0, 0, 1, 1], [], []>} : vector<8x128xbf16>, vector<128x1024xbf16>, vector<8x1024xf32> -> vector<8x1024xf32>
    %c0_17 = arith.constant 0 : index
    %c0_18 = arith.constant 0 : index
    %24 = vector.load %arg9[%c0_17, %c0_18] : memref<1x1024xf32, #tpu.memory_space<vmem>>, vector<1x1024xf32>
    %25 = vector.broadcast %24 : vector<1x1024xf32> to vector<8x1024xf32>
    %26 = arith.addf %23, %25 : vector<8x1024xf32>
    %cst_19 = arith.constant 0.000000e+00 : f32
    %27 = vector.broadcast %cst_19 : f32 to vector<8x1024xf32>
    %28 = arith.maximumf %26, %27 : vector<8x1024xf32>
    %c0_20 = arith.constant 0 : index
    %c0_21 = arith.constant 0 : index
    %29 = vector.load %arg17[%c0_20, %c0_21] : memref<1x1024xf32, #tpu.memory_space<vmem>>, vector<1x1024xf32>
    %cst_22 = arith.constant dense<0xFF800000> : vector<1024xf32>
    %30 = vector.multi_reduction <maximumf>, %28, %cst_22 [0] : vector<8x1024xf32> to vector<1024xf32>
    %31 = vector.shape_cast %30 : vector<1024xf32> to vector<1x1024xf32>
    %32 = arith.maximumf %29, %31 : vector<1x1024xf32>
    %c0_23 = arith.constant 0 : index
    %c0_24 = arith.constant 0 : index
    %33 = vector.load %arg17[%c0_23, %c0_24] : memref<1x1024xf32, #tpu.memory_space<vmem>>, vector<1x1024xf32>
    tpu.vector_store %arg17[%c0_23, %c0_24], %32 {strides = array<i32>} : memref<1x1024xf32, #tpu.memory_space<vmem>>, vector<1x1024xf32>,
    %c1_i32 = arith.constant 1 : i32
    %34 = arith.cmpi eq, %arg1, %c1_i32 : i32
    %35 = arith.extui %34 : i1 to i32
    %c0_i32_25 = arith.constant 0 : i32
    %36 = arith.cmpi ne, %35, %c0_i32_25 : i32
    scf.if %36 {
      %c0_26 = arith.constant 0 : index
      %c0_27 = arith.constant 0 : index
      %37 = vector.load %arg17[%c0_26, %c0_27] : memref<1x1024xf32, #tpu.memory_space<vmem>>, vector<1x1024xf32>
      %38 = arith.truncf %37 : vector<1x1024xf32> to vector<1x1024xbf16>
      %c0_28 = arith.constant 0 : index
      %c0_29 = arith.constant 0 : index
      %39 = vector.load %arg10[%c0_28, %c0_29] : memref<1024x512xbf16, #tpu.memory_space<vmem>>, vector<1024x512xbf16>
      %cst_30 = arith.constant dense<0.000000e+00> : vector<1x512xf32>
      %40 = tpu.matmul %38, %39, %cst_30 {dimension_numbers = #tpu.dot_dimension_numbers<[1], [0], [0], [1], [0, 0, 1, 1], [], []>} : vector<1x1024xbf16>, vector<1024x512xbf16>, vector<1x512xf32> -> vector<1x512xf32>
      %c0_31 = arith.constant 0 : index
      %c0_32 = arith.constant 0 : index
      %41 = vector.load %arg11[%c0_31, %c0_32] : memref<1x512xf32, #tpu.memory_space<vmem>>, vector<1x512xf32>
      %42 = arith.addf %40, %41 : vector<1x512xf32>
      %cst_33 = arith.constant 0.000000e+00 : f32
      %43 = vector.broadcast %cst_33 : f32 to vector<1x512xf32>
      %44 = arith.maximumf %42, %43 : vector<1x512xf32>
      %45 = arith.truncf %44 : vector<1x512xf32> to vector<1x512xbf16>
      %c0_34 = arith.constant 0 : index
      %c0_35 = arith.constant 0 : index
      %46 = vector.load %arg12[%c0_34, %c0_35] : memref<512x256xbf16, #tpu.memory_space<vmem>>, vector<512x256xbf16>
      %cst_36 = arith.constant dense<0.000000e+00> : vector<1x256xf32>
      %47 = tpu.matmul %45, %46, %cst_36 {dimension_numbers = #tpu.dot_dimension_numbers<[1], [0], [0], [1], [0, 0, 1, 1], [], []>} : vector<1x512xbf16>, vector<512x256xbf16>, vector<1x256xf32> -> vector<1x256xf32>
      %c0_37 = arith.constant 0 : index
      %c0_38 = arith.constant 0 : index
      %48 = vector.load %arg13[%c0_37, %c0_38] : memref<1x256xf32, #tpu.memory_space<vmem>>, vector<1x256xf32>
      %49 = arith.addf %47, %48 : vector<1x256xf32>
      %cst_39 = arith.constant 0.000000e+00 : f32
      %50 = vector.broadcast %cst_39 : f32 to vector<1x256xf32>
      %51 = arith.maximumf %49, %50 : vector<1x256xf32>
      %52 = arith.truncf %51 : vector<1x256xf32> to vector<1x256xbf16>
      %c0_40 = arith.constant 0 : index
      %c0_41 = arith.constant 0 : index
      %53 = vector.load %arg14[%c0_40, %c0_41] : memref<256x9xbf16, #tpu.memory_space<vmem>>, vector<256x9xbf16>
      %cst_42 = arith.constant dense<0.000000e+00> : vector<1x9xf32>
      %54 = tpu.matmul %52, %53, %cst_42 {dimension_numbers = #tpu.dot_dimension_numbers<[1], [0], [0], [1], [0, 0, 1, 1], [], []>} : vector<1x256xbf16>, vector<256x9xbf16>, vector<1x9xf32> -> vector<1x9xf32>
      %c0_43 = arith.constant 0 : index
      %c0_44 = arith.constant 0 : index
      %55 = vector.load %arg15[%c0_43, %c0_44] : memref<1x9xf32, #tpu.memory_space<vmem>>, vector<1x9xf32>
      %56 = arith.addf %54, %55 : vector<1x9xf32>
      %57 = vector.shape_cast %56 : vector<1x9xf32> to vector<1x1x9xf32>
      %c0_45 = arith.constant 0 : index
      %c0_46 = arith.constant 0 : index
      %c0_47 = arith.constant 0 : index
      %58 = vector.load %arg16[%c0_45, %c0_46, %c0_47] : memref<1x1x9xf32, #tpu.memory_space<vmem>>, vector<1x1x9xf32>
      tpu.vector_store %arg16[%c0_45, %c0_46, %c0_47], %57 {strides = array<i32>} : memref<1x1x9xf32, #tpu.memory_space<vmem>>, vector<1x1x9xf32>,
    } else {
    }
    return
  }
  func.func @transform_0(%arg0: i32, %arg1: i32) -> (i32, i32, i32) {
    %c0_i32 = arith.constant 0 : i32
    %c0_i32_0 = arith.constant 0 : i32
    return %arg0, %arg1, %c0_i32 : i32, i32, i32
  }
  func.func @transform_1(%arg0: i32, %arg1: i32) -> (i32, i32, i32) {
    %c0_i32 = arith.constant 0 : i32
    %c0_i32_0 = arith.constant 0 : i32
    %c0_i32_1 = arith.constant 0 : i32
    return %arg0, %c0_i32, %c0_i32_0 : i32, i32, i32
  }
  func.func @transform_2(%arg0: i32, %arg1: i32) -> (i32, i32) {
    %c0_i32 = arith.constant 0 : i32
    %c0_i32_0 = arith.constant 0 : i32
    %c0_i32_1 = arith.constant 0 : i32
    return %c0_i32, %c0_i32_0 : i32, i32
  }
  func.func @transform_3(%arg0: i32, %arg1: i32) -> (i32, i32) {
    %c0_i32 = arith.constant 0 : i32
    %c0_i32_0 = arith.constant 0 : i32
    %c0_i32_1 = arith.constant 0 : i32
    return %c0_i32, %c0_i32_0 : i32, i32
  }
  func.func @transform_4(%arg0: i32, %arg1: i32) -> (i32, i32) {
    %c0_i32 = arith.constant 0 : i32
    %c0_i32_0 = arith.constant 0 : i32
    %c0_i32_1 = arith.constant 0 : i32
    return %c0_i32, %c0_i32_0 : i32, i32
  }
  func.func @transform_5(%arg0: i32, %arg1: i32) -> (i32, i32) {
    %c0_i32 = arith.constant 0 : i32
    %c0_i32_0 = arith.constant 0 : i32
    %c0_i32_1 = arith.constant 0 : i32
    return %c0_i32, %c0_i32_0 : i32, i32
  }
  func.func @transform_6(%arg0: i32, %arg1: i32) -> (i32, i32) {
    %c0_i32 = arith.constant 0 : i32
    %c0_i32_0 = arith.constant 0 : i32
    %c0_i32_1 = arith.constant 0 : i32
    return %c0_i32, %c0_i32_0 : i32, i32
  }
  func.func @transform_7(%arg0: i32, %arg1: i32) -> (i32, i32) {
    %c0_i32 = arith.constant 0 : i32
    %c0_i32_0 = arith.constant 0 : i32
    %c0_i32_1 = arith.constant 0 : i32
    return %c0_i32, %c0_i32_0 : i32, i32
  }
  func.func @transform_8(%arg0: i32, %arg1: i32) -> (i32, i32) {
    %c0_i32 = arith.constant 0 : i32
    %c0_i32_0 = arith.constant 0 : i32
    %c0_i32_1 = arith.constant 0 : i32
    return %c0_i32, %c0_i32_0 : i32, i32
  }
  func.func @transform_9(%arg0: i32, %arg1: i32) -> (i32, i32) {
    %c0_i32 = arith.constant 0 : i32
    %c0_i32_0 = arith.constant 0 : i32
    %c0_i32_1 = arith.constant 0 : i32
    return %c0_i32, %c0_i32_0 : i32, i32
  }
  func.func @transform_10(%arg0: i32, %arg1: i32) -> (i32, i32) {
    %c0_i32 = arith.constant 0 : i32
    %c0_i32_0 = arith.constant 0 : i32
    %c0_i32_1 = arith.constant 0 : i32
    return %c0_i32, %c0_i32_0 : i32, i32
  }
  func.func @transform_11(%arg0: i32, %arg1: i32) -> (i32, i32) {
    %c0_i32 = arith.constant 0 : i32
    %c0_i32_0 = arith.constant 0 : i32
    %c0_i32_1 = arith.constant 0 : i32
    return %c0_i32, %c0_i32_0 : i32, i32
  }
  func.func @transform_12(%arg0: i32, %arg1: i32) -> (i32, i32) {
    %c0_i32 = arith.constant 0 : i32
    %c0_i32_0 = arith.constant 0 : i32
    %c0_i32_1 = arith.constant 0 : i32
    return %c0_i32, %c0_i32_0 : i32, i32
  }
  func.func @transform_13(%arg0: i32, %arg1: i32) -> (i32, i32) {
    %c0_i32 = arith.constant 0 : i32
    %c0_i32_0 = arith.constant 0 : i32
    %c0_i32_1 = arith.constant 0 : i32
    return %c0_i32, %c0_i32_0 : i32, i32
  }
  func.func @transform_14(%arg0: i32, %arg1: i32) -> (i32, i32, i32) {
    %c0_i32 = arith.constant 0 : i32
    %c0_i32_0 = arith.constant 0 : i32
    %c0_i32_1 = arith.constant 0 : i32
    return %arg0, %c0_i32, %c0_i32_0 : i32, i32, i32
  }
}

</mosaic_0001>

<bundles_post_ra>
// kernel: tpu_custom_call.1
= control target key start
LH: loop header
LB: loop body
LE: loop exit
PB: predicated region body
PF: predicated region fallthrough
CT: control target
= control target key end

     0   :  { %s6010_s0 = inlined_call_operand.vmem [shape: f32[2,16,3], index: 0, kind: input, shape index: {}]   ;;  %s6011_s1 = inlined_call_operand.vmem [shape: f32[2,3,3], index: 1, kind: input, shape index: {}]   ;;  %s6012_s2 = inlined_call_operand.vmem [shape: bf16[3,128], index: 2, kind: input, shape index: {}]   ;;  %s6013_s3 = inlined_call_operand.vmem [shape: f32[1,128], index: 3, kind: input, shape index: {}]   ;;  %s6014_s4 = inlined_call_operand.vmem [shape: bf16[128,128], index: 4, kind: input, shape index: {}]   ;;  %s6015_s5 = inlined_call_operand.vmem [shape: f32[1,128], index: 5, kind: input, shape index: {}]   ;;  %s6016_s6 = inlined_call_operand.hbm [shape: bf16[128,1024], index: 6, kind: input, shape index: {}]   ;;  %s6017_s7 = inlined_call_operand.vmem [shape: f32[1,1024], index: 7, kind: input, shape index: {}]   ;;  %s6018_s8 = inlined_call_operand.hbm [shape: bf16[1024,512], index: 8, kind: input, shape index: {}]   ;;  %s6019_s9 = inlined_call_operand.vmem [shape: f32[1,512], index: 9, kind: input, shape index: {}]   ;;  %s6020_s10 = inlined_call_operand.hbm [shape: bf16[512,256], index: 10, kind: input, shape index: {}]   ;;  %s6021_s11 = inlined_call_operand.vmem [shape: f32[1,256], index: 11, kind: input, shape index: {}]   ;;  %s6022_s12 = inlined_call_operand.vmem [shape: bf16[256,9], index: 12, kind: input, shape index: {}]   ;;  %s6023_s13 = inlined_call_operand.vmem [shape: f32[1,9], index: 13, kind: input, shape index: {}]   ;;  %s6024_s14 = inlined_call_operand.hbm [shape: f32[2,1,9], index: 14, kind: output, shape index: {}]  }
   0x1   :  { %6041 = sst [smem:[#allocation23_spill]] %s6021_s11 }
   0x2   :  { %6042 = sst [smem:[#allocation24_spill]] %s6022_s12 }
   0x3   :  { %6043 = sst [smem:[#allocation25_spill]] %s6023_s13 }
   0x4   :  { %6044 = sst [smem:[#allocation26_spill]] %s6024_s14 }
   0x5   :  { %19 = vsyncpa [#allocation4], 0 }
   0x6   :  { %20 = vsyncpa [#allocation7], 0 }
   0x7   :  { %21 = vsyncpa [#allocation5], 0 }
   0x8   :  { %23 = vsyncpa [#allocation5 + $0x1], 0  ;;  %s5585_s28 = smov 0   ;;  %s5587_s29 = smov 0  }
   0x9   :  { %s5589_s30 = smov 0   ;;  %s5591_s15 = smov 0  }
   0xa   :  { %s5593_s1 = smov 0   ;;  %s5595_s16 = smov 0  }
   0xb   :  { %s5597_s17 = smov 0   ;;  %s5599_s18 = smov 0  }
   0xc LB: > { %6045 = sst [smem:[#allocation13_spill]] %s5464_s28  ;;  %s4167_s19 = sadd.s32 4294967295, %s5492_s18   ;;  %s5492_s18 = sphi %s5599_s18, %s29_s18   ;;  %s5488_s17 = sphi %s5597_s17, %s6078_s17   ;;  %s5484_s16 = sphi %s5595_s16, %s6077_s16   ;;  %s5480_s1 = sphi %s5593_s1, %s6076_s1   ;;  %s5476_s15 = sphi %s5591_s15, %s6075_s15   ;;  %s5472_s30 = sphi %s5589_s30, %s6074_s30   ;;  %s5468_s29 = sphi %s5587_s29, %s6080_s29   ;;  %s5464_s28 = sphi %s5585_s28, %s6079_s28  }
   0xd   : > { %6046 = sst [smem:[#allocation14_spill]] %s5472_s30  ;;  %s4168_s20 = sadd.s32 4294967294, %s5492_s18  }
   0xe   : > { %6047 = sst [smem:[#allocation15_spill]] %s5484_s16  ;;  %s38_s21 = sadd.s32 1, %s5484_s16 }
   0xf   : > { %6048 = sst [smem:[#allocation16_spill]] %s5488_s17  ;;  %s41_s22 = sadd.s32 1, %s5488_s17 }
  0x10   : > { %6049 = sst [smem:[#allocation17_spill]] %s5492_s18  ;;  %p39_p0 = scmp.ge.s32.totalorder %s38_s21, 2 }
  0x11   : > { %s354_s23 = sadd.s32 1, %s5472_s30  ;;  %p364_p1 = scmp.ne.s32.totalorder %s5472_s30, %s5468_s29 }
  0x12   : > { %p365_p2 = scmp.eq.s32.totalorder %s4167_s19, 3  ;;  %s6082_s21 = smov (%p39_p0, %s38_s21), 0 }
  0x13   : > { %6050 = sst [smem:[#allocation18_spill]] %s6082_s21  ;;  %s6084_s22 = smov (!%p39_p0, %s41_s22), %s5488_s17 }
  0x14   : > { %p5635_p3 = por %p365_p2, %p364_p1  ;;  %p370_p4 = scmp.ne.s32.totalorder %s5468_s29, %s5464_s28 }
  0x15   : > { %p43_p5 = scmp.ge.s32.totalorder %s6084_s22, 2  ;;  %p371_p6 = scmp.eq.s32.totalorder %s4168_s20, 3 }
  0x16   : > { %s6051_s24 = scalar_select %p5635_p3, 1, 0 }
  0x17   : > { %p4169_p7 = scmp.ge.s32.totalorder %s5492_s18, 1  ;;  %p378_p8 = scmp.lt.s32.totalorder %s5492_s18, 5 }
  0x18   : > { %6052 = sst [smem:[#allocation19_spill]] %s6051_s24  ;;  %s6086_s22 = smov (%p43_p5, %s6084_s22), 0 }
  0x19   : > { %6053 = sst [smem:[#allocation20_spill]] %s6086_s22  ;;  %p5645_p9 = por %p371_p6, %p370_p4 }
  0x1a   : > { %p5649_p10 = pnand %p4169_p7, %p378_p8  ;;  %s351_s27 = ssub.s32 %s5488_s17, %s6086_s22 }
  0x1b   : > { %s6054_s25 = scalar_select %p5645_p9, 1, 0 }
  0x1c   : > { %s6056_s26 = scalar_select %p5649_p10, 1, 0 }
  0x1d   : > { %6055 = sst [smem:[#allocation21_spill]] %s6054_s25  ;;  %p352_p11 = scmp.eq.s32.totalorder %s351_s27, 0 }
  0x1e   : > { %p4701_p12 = pneg %p5649_p10  ;;  %p5657_p13 = scmp.eq.s32.totalorder %s4167_s19, 0 }
  0x1f   : > { %s5662_s21 = scalar_select %p352_p11, %s5472_s30, %s354_s23  }
  0x20   : > { %s6057_s20 = scalar_select %p5657_p13, 1, 0 }
  0x21   : > { %6058 = sst [smem:[#allocation22_spill]] %s5662_s21  ;;  %p5666_p0 = pnand %p5657_p13, %p4701_p12 }
  0x22   : > { %s5494_s25 = smov [#allocation6]   ;;  %s5306_s17 = scalar_lea.hbm %s6018_s8, 32768 }
  0x23   : > { %s418_s28 = sshll.u32 %s5494_s25, 4  ;;  %p5307_p1 = scmp.ne.s32.totalorder %s6018_s8, %s5306_s17  ;;  %s419_s28 = int_to_ptr.vmem [resolvable:$true] %s418_s28 }
  0x24   : > { %p5678_p2 = pneg %p5666_p0  ;;  %p5313_p6 = scmp.lt.u32.totalorder %s5306_s17, %s6018_s8 }
  0x26   : > { %p5309_p4 = pnand %p5678_p2, %p5307_p1 }
  0x28   : > { %p5310_p5 = pneg %p5309_p4 }
  0x2a   : > { %p5315_p7 = pnand %p5313_p6, %p5310_p5 }
  0x2c   : > { %5318 = shalt.err (!%p5315_p7)
}
  0x2d   : > { %s5319_s22 = scalar_lea.vmem %s419_s28, 32768  ;;  %p5327_p9 = scmp.lt.s32.totalorder %s419_s28, %s419_s28 }
  0x2e   : > { %p5320_p8 = scmp.ne.s32.totalorder %s419_s28, %s5319_s22  ;;  %p5328_p3 = scmp.lt.s32.totalorder %s5319_s22, %s5319_s22 }
  0x30   : > { %p5322_p11 = pnand %p5320_p8, %p5678_p2  ;;  %p5329_p13 = por %p5328_p3, %p5327_p9 }
  0x32   : > { %p5323_p12 = pneg %p5322_p11 }
  0x34   : > { %p5330_p10 = pnand %p5329_p13, %p5323_p12 }
  0x36   : > { %5333 = shalt.err (!%p5330_p10)
}
  0x37   : > { %s5495_s18 = smov 256   ;;  %s5496_s27 = smov 16  }
  0x38   : > { %4707 = dma.hbm_to_vmem [thread:$0]  (!%p5666_p0), %s6018_s8, 32768, %s419_s28, [#allocation7], %s5495_s18, %s5495_s18, %s5496_s27  }
  0x39   : > { %s5497_s19 = smov [#allocation3]   ;;  %s5334_s24 = scalar_lea.hbm %s6016_s6, 8192 }
  0x3a   : > { %s402_s25 = sshll.u32 %s5497_s19, 4  ;;  %p5335_p3 = scmp.ne.s32.totalorder %s6016_s6, %s5334_s24  ;;  %s403_s25 = int_to_ptr.vmem [resolvable:$true] %s402_s25 }
  0x3b   : > { %p5341_p13 = scmp.lt.u32.totalorder %s5334_s24, %s6016_s6 }
  0x3c   : > { %p5337_p9 = pnand %p5335_p3, %p5678_p2 }
  0x3e   : > { %p5338_p10 = pneg %p5337_p9 }
  0x40   : > { %p5343_p1 = pnand %p5341_p13, %p5338_p10 }
  0x42   : > { %5346 = shalt.err (!%p5343_p1)
}
  0x43   : > { %s5347_s28 = scalar_lea.vmem %s403_s25, 8192  ;;  %p5355_p7 = scmp.lt.s32.totalorder %s403_s25, %s403_s25 }
  0x44   : > { %p5348_p4 = scmp.ne.s32.totalorder %s403_s25, %s5347_s28  ;;  %p5356_p8 = scmp.lt.s32.totalorder %s5347_s28, %s5347_s28 }
  0x46   : > { %p5350_p5 = pnand %p5348_p4, %p5678_p2  ;;  %p5357_p11 = por %p5356_p8, %p5355_p7 }
  0x48   : > { %p5351_p6 = pneg %p5350_p5 }
  0x4a   : > { %p5358_p12 = pnand %p5357_p11, %p5351_p6 }
  0x4c   : > { %5361 = shalt.err (!%p5358_p12)
}
  0x4d   : > { %s5498_s13 = smov 512   ;;  %s5499_s14 = smov 32  }
  0x4e   : > { %4704 = dma.hbm_to_vmem [thread:$0]  (!%p5666_p0), %s6016_s6, 8192, %s403_s25, [#allocation4], %s5498_s13, %s5498_s13, %s5499_s14  }
  0x4f   : > { %s5500_s30 = smov [#allocation8]   ;;  %s5362_s21 = scalar_lea.hbm %s6020_s10, 8192 }
  0x50   : > { %s434_s24 = sshll.u32 %s5500_s30, 4  ;;  %p5363_p3 = scmp.ne.s32.totalorder %s6020_s10, %s5362_s21  ;;  %s435_s24 = int_to_ptr.vmem [resolvable:$true] %s434_s24 }
  0x51   : > { %p5369_p13 = scmp.lt.u32.totalorder %s5362_s21, %s6020_s10 }
  0x52   : > { %p5365_p9 = pnand %p5363_p3, %p5678_p2 }
  0x54   : > { %p5366_p10 = pneg %p5365_p9 }
  0x56   : > { %p5371_p1 = pnand %p5369_p13, %p5366_p10 }
  0x58   : > { %5374 = shalt.err (!%p5371_p1)
}
  0x59   : > { %s5375_s25 = scalar_lea.vmem %s435_s24, 8192  ;;  %p5383_p7 = scmp.lt.s32.totalorder %s435_s24, %s435_s24 }
  0x5a   : > { %p5376_p4 = scmp.ne.s32.totalorder %s435_s24, %s5375_s25  ;;  %p5384_p8 = scmp.lt.s32.totalorder %s5375_s25, %s5375_s25 }
  0x5c   : > { %p5378_p5 = pnand %p5376_p4, %p5678_p2  ;;  %p5385_p11 = por %p5384_p8, %p5383_p7 }
  0x5e   : > { %p5379_p6 = pneg %p5378_p5 }
  0x60   : > { %p5386_p12 = pnand %p5385_p11, %p5379_p6 }
  0x62   : > { %5389 = shalt.err (!%p5386_p12)
}
  0x63   : > { %s5501_s13 = smov 128   ;;  %s5502_s14 = smov 8  }
  0x64   : > { %4710 = dma.hbm_to_vmem [thread:$0]  (!%p5666_p0), %s6020_s10, 8192, %s435_s24, [#allocation7], %s5501_s13, %s5501_s13, %s5502_s14  }
  0x65   : > { %p6061_p3 = scmp.ne.s32.totalorder %s6056_s26, 0 }
  0x66   : > { %p6062_p9 = scmp.ne.s32.totalorder (!%p6061_p3), %s6057_s20, 0 }
  0x67   : > { %477 = sbr.rel (%p6061_p3) target bundleno = 1820 (0x71c), region = 76 }
  0x6e   : > { %5451 = dma.done.wait (%p6062_p9), [#allocation4], 8192  }
  0x6f   : > { %5453 = vsyncadd (%p6062_p9), [#allocation4], 4294959104 }
  0x70   : > { %5455 = dma.done.wait (%p6062_p9), [#allocation7], 40960  }
  0x71   : > { %5457 = vsyncadd (%p6062_p9), [#allocation7], 4294926336  ;;  %s535_s16 = sand.u32 1, %s5468_s29   ;;  %p537_p0 = scmp.lt.s32.totalorder %s5480_s1, 1 }
  0x72   : > { %p539_p2 = scmp.lt.s32.totalorder %s5476_s15, 1  ;;  %s5750_s20 = scalar_lea.vmem [#allocation9], %s535_s16 }
  0x73   : > { %s538_s26 = scalar_select %p537_p0, %s5480_s1, 1 }
  0x74   : > { %s540_s23 = scalar_select %p539_p2, %s5476_s15, 1 }
  0x75   : > { %s4178_s30 = sshll.u32 %s538_s26, 1  ;;  %p4180_p10 = scmp.ne.s32.totalorder %s5476_s15, 0 }
  0x76   : > { %s542_s24 = sadd.s32 %s4178_s30, %s540_s23  ;;  %v5503_v0 = vmov (!%p4180_p10), -inf  }
  0x77   : > { %s4179_s18 = sshll.u32 %s542_s24, 3  ;;  %553 = sbr.rel (%p4180_p10) target bundleno = 126 (0x7e), region = 92  ;;  %554 = vst [vmem:[#allocation2] sm:$0xff] (!%p4180_p10), %v5503_v0 }
  0x78   : > { %s544_s17 = scalar_lea.vmem %s6010_s0, %s4179_s18 }
  0x7e PF: > { %v557_v1 = vld [vmem:[%s6012_s2] sm:$0x3]  ;;  %vm569_vm0 = vcmask 1040384   ;;  %vm570_vm1 = vcmask 1041408   ;;  %v5504_v2 = vmov 0.0   ;;  %v5505_v3 = vmov 65535  }
  0x7f   : > { %4629 = vmatprep.subr.bf16.mxu0 %v5504_v2  ;;  %v571_v4 = vsel %vm569_vm0, 4294967295, %v5505_v3  ;;  %v555_v5 = vld [vmem:[%s544_s17] sm:$0xff]  ;;  %4635 = vmatprep.subr.bf16.mxu1 %v5504_v2  ;;  %vm5506_vm2 = vmmov 0   ;;  %v4802_v10 = vld [vmem:[%s6014_s4 + $0x8] sm:$0xff]   ;;  %vm565_vm3 = vcmask 23552   ;;  %v4803_v11 = vld [vmem:[%s6014_s4 + $0x10] sm:$0xff]  }
  0x80   : > { %v572_v6 = vsel %vm570_vm1, %v571_v4, 0  ;;  %4631 = vmatprep.mubr.msk.bf16.mxu0 %vm5506_vm2, %v5504_v2  ;;  %v4801_v7 = vld [vmem:[%s6014_s4] sm:$0xff]   ;;  %4651 = vmatprep.mubr.msk.bf16.mxu1 %vm5506_vm2, %v5504_v2  ;;  %v556_v9 = vpack.c.bf16 %v555_v5, %v555_v5  ;;  %v4804_v12 = vld [vmem:[%s6014_s4 + $0x18] sm:$0xff]   ;;  %v4806_v14 = vld [vmem:[%s6014_s4 + $0x28] sm:$0xff]   ;;  %p4256_p13 = scmp.ne.s32.totalorder %s5476_s15, 1 }
  0x81   : > { %v574_v8 = vand.u32 %v572_v6, %v557_v1  ;;  %4636 = vmatpush3.bf16.msra.mxu1 %v4801_v7  ;;  %v4805_v13 = vld [vmem:[%s6014_s4 + $0x20] sm:$0xff]   ;;  %v4807_v15 = vld [vmem:[%s6014_s4 + $0x30] sm:$0xff]   ;;  %v4808_v16 = vld [vmem:[%s6014_s4 + $0x38] sm:$0xff]   ;;  %s6063_s24 = sld [smem:[#allocation24_spill]] (!%p4256_p13)  ;;  %s6064_s18 = sld [smem:[#allocation23_spill]] (!%p4256_p13)  ;;  %vm4037_vm4 = vcmask (!%p4256_p13), 65536  }
  0x82   : > { %4637 = vmatprep.subr.bf16.mxu1 %v5504_v2  ;;  %v731_v17 = vld [vmem:[#allocation3] sm:$0xff]  ;;  %v732_v19 = vld [vmem:[#allocation3 + $0x8] sm:$0xff]  ;;  %v4181_v49 = vld [vmem:[%s6013_s3] ss:$0 sm:$0xff]  ;;  %s6065_s17 = sld [smem:[#allocation25_spill]] (!%p4256_p13) }
  0x83   : > { %4630 = vmatpush3.bf16.msra.mxu0 %v574_v8  ;;  %v735_v18 = vld [vmem:[#allocation3 + $0x20] sm:$0xff]  ;;  %v736_v22 = vld [vmem:[#allocation3 + $0x28] sm:$0xff] }
  0x84   : > { %v4192_v20 = vcombine.low %v731_v17, %v735_v18  ;;  %v4193_v21 = vcombine.high %v731_v17, %v735_v18  ;;  %v739_v23 = vld [vmem:[#allocation3 + $0x40] sm:$0xff]  ;;  %v4194_v25 = vcombine.low %v732_v19, %v736_v22  ;;  %v4195_v26 = vcombine.high %v732_v19, %v736_v22  ;;  %v740_v54 = vld [vmem:[#allocation3 + $0x48] sm:$0xff] }
  0x85   : > { %4638 = vmatpush3.bf16.msra.mxu1 %v4802_v10  ;;  %v743_v24 = vld [vmem:[#allocation3 + $0x60] sm:$0xff]  ;;  %v744_v55 = vld [vmem:[#allocation3 + $0x68] sm:$0xff] }
  0x86   : > { %4632 = vmatmul.mubr.msk.bf16.vlgmr.msra.gmra.mrb[0].mxu0 %vm565_vm3, %v556_v9  ;;  %4639 = vmatprep.subr.bf16.mxu1 %v5504_v2  ;;  %v4201_v27 = vcombine.high %v739_v23, %v743_v24  ;;  %v4200_v28 = vcombine.low %v739_v23, %v743_v24  ;;  %v747_v29 = vld [vmem:[#allocation3 + $0x80] sm:$0xff]  ;;  %v4203_v59 = vcombine.high %v740_v54, %v744_v55  ;;  %v748_v60 = vld [vmem:[#allocation3 + $0x88] sm:$0xff] }
  0x87   : > { %1157 = vmatprep.subr.bf16.mxu0 %v4193_v21  ;;  %v751_v30 = vld [vmem:[#allocation3 + $0xa0] sm:$0xff]  ;;  %v752_v61 = vld [vmem:[#allocation3 + $0xa8] sm:$0xff]  ;;  %v4202_v62 = vcombine.low %v740_v54, %v744_v55 }
  0x88   : > { %1158 = vmatpush1.bf16.msra.mxu0 %v4192_v20  ;;  %v4209_v31 = vcombine.high %v747_v29, %v751_v30  ;;  %v4208_v32 = vcombine.low %v747_v29, %v751_v30  ;;  %v755_v33 = vld [vmem:[#allocation3 + $0xc0] sm:$0xff]  ;;  %v4211_v63 = vcombine.high %v748_v60, %v752_v61  ;;  %v756_v0 = vld [vmem:[#allocation3 + $0xc8] sm:$0xff]  ;;  %v738_v29 = vld [vmem:[#allocation3 + $0x38] sm:$0xff] }
  0x89   : > { %4640 = vmatpush3.bf16.msra.mxu1 %v4803_v11  ;;  %1159 = vmatprep.subr.bf16.mxu0 %v4201_v27  ;;  %v759_v34 = vld [vmem:[#allocation3 + $0xe0] sm:$0xff]  ;;  %v760_v1 = vld [vmem:[#allocation3 + $0xe8] sm:$0xff]  ;;  %v734_v27 = vld [vmem:[#allocation3 + $0x18] sm:$0xff] }
  0x8a   : > { %4641 = vmatprep.subr.bf16.mxu1 %v5504_v2  ;;  %v4217_v35 = vcombine.high %v755_v33, %v759_v34  ;;  %v4216_v36 = vcombine.low %v755_v33, %v759_v34  ;;  %v763_v37 = vld [vmem:[#allocation3 + $0x100] sm:$0xff]  ;;  %v4219_v3 = vcombine.high %v756_v0, %v760_v1  ;;  %v764_v4 = vld [vmem:[#allocation3 + $0x108] sm:$0xff]  ;;  %v4218_v6 = vcombine.low %v756_v0, %v760_v1  ;;  %v4183_v34 = vld [vmem:[%s6015_s5] ss:$0 sm:$0xff] }
  0x8b   : > { %v767_v38 = vld [vmem:[#allocation3 + $0x120] sm:$0xff]  ;;  %v768_v5 = vld [vmem:[#allocation3 + $0x128] sm:$0xff]  ;;  %v5507_v33 = vmov 0   ;;  %v765_v0 = vld [vmem:[#allocation3 + $0x110] sm:$0xff] }
  0x8c   : > { %1160 = vmatpush1.bf16.msra.mxu0 %v4200_v28  ;;  %v4225_v39 = vcombine.high %v763_v37, %v767_v38  ;;  %v4224_v40 = vcombine.low %v763_v37, %v767_v38  ;;  %v771_v41 = vld [vmem:[#allocation3 + $0x140] sm:$0xff]  ;;  %v4227_v7 = vcombine.high %v764_v4, %v768_v5  ;;  %v772_v8 = vld [vmem:[#allocation3 + $0x148] sm:$0xff]  ;;  %v4226_v10 = vcombine.low %v764_v4, %v768_v5  ;;  %v741_v38 = vld [vmem:[#allocation3 + $0x50] sm:$0xff] }
  0x8d   : > { %4642 = vmatpush3.bf16.msra.mxu1 %v4804_v12  ;;  %1161 = vmatprep.subr.bf16.mxu0 %v4209_v31  ;;  %v775_v42 = vld [vmem:[#allocation3 + $0x160] sm:$0xff]  ;;  %v776_v9 = vld [vmem:[#allocation3 + $0x168] sm:$0xff]  ;;  %v4198_v31 = vcombine.low %v734_v27, %v738_v29  ;;  %v769_v1 = vld [vmem:[#allocation3 + $0x130] sm:$0xff] }
  0x8e   : > { %4643 = vmatprep.subr.bf16.mxu1 %v5504_v2  ;;  %v4233_v43 = vcombine.high %v771_v41, %v775_v42  ;;  %v4232_v44 = vcombine.low %v771_v41, %v775_v42  ;;  %v779_v45 = vld [vmem:[#allocation3 + $0x180] sm:$0xff]  ;;  %v4235_v11 = vcombine.high %v772_v8, %v776_v9  ;;  %v780_v12 = vld [vmem:[#allocation3 + $0x188] sm:$0xff]  ;;  %1189 = vmatprep.mubr.bf16.mxu0 %v5507_v33  ;;  %v742_v41 = vld [vmem:[#allocation3 + $0x58] sm:$0xff] }
  0x8f   : > { %v783_v46 = vld [vmem:[#allocation3 + $0x1a0] sm:$0xff]  ;;  %v788_v19 = vld [vmem:[#allocation3 + $0x1c8] sm:$0xff]  ;;  %v746_v42 = vld [vmem:[#allocation3 + $0x78] sm:$0xff] }
  0x90   : > { %1162 = vmatpush1.bf16.msra.mxu0 %v4208_v32  ;;  %v4241_v47 = vcombine.high %v779_v45, %v783_v46  ;;  %v4240_v48 = vcombine.low %v779_v45, %v783_v46  ;;  %v787_v17 = vld [vmem:[#allocation3 + $0x1c0] sm:$0xff]  ;;  %v792_v21 = vld [vmem:[#allocation3 + $0x1e8] sm:$0xff]  ;;  %v4199_v32 = vcombine.high %v734_v27, %v738_v29  ;;  %v794_v27 = vld [vmem:[#allocation3 + $0x1f8] sm:$0xff] }
  0x91   : > { %4644 = vmatpush3.bf16.msra.mxu1 %v4805_v13  ;;  %1163 = vmatprep.subr.bf16.mxu0 %v4217_v35  ;;  %v784_v13 = vld [vmem:[#allocation3 + $0x1a8] sm:$0xff]  ;;  %v791_v18 = vld [vmem:[#allocation3 + $0x1e0] sm:$0xff]  ;;  %v4250_v23 = vcombine.low %v788_v19, %v792_v21  ;;  %v4251_v24 = vcombine.high %v788_v19, %v792_v21  ;;  %v786_v19 = vld [vmem:[#allocation3 + $0x1b8] sm:$0xff] }
  0x92   : > { %4645 = vmatprep.subr.bf16.mxu1 %v5504_v2  ;;  %v4249_v20 = vcombine.high %v787_v17, %v791_v18  ;;  %v4248_v22 = vcombine.low %v787_v17, %v791_v18  ;;  %v785_v17 = vld [vmem:[#allocation3 + $0x1b0] sm:$0xff]  ;;  %v782_v18 = vld [vmem:[#allocation3 + $0x198] sm:$0xff] }
  0x93   : > { %v4246_v29 = vcombine.low %v782_v18, %v786_v19 }
  0x94   : > { %1164 = vmatpush1.bf16.msra.mxu0 %v4216_v36 }
  0x95   : > { %4646 = vmatpush3.bf16.msra.mxu1 %v4806_v14  ;;  %1165 = vmatprep.subr.bf16.mxu0 %v4225_v39  ;;  %v4234_v14 = vcombine.low %v772_v8, %v776_v9  ;;  %v773_v8 = vld [vmem:[#allocation3 + $0x150] sm:$0xff] }
  0x96   : > { %4647 = vmatprep.subr.bf16.mxu1 %v5504_v2  ;;  %v777_v9 = vld [vmem:[#allocation3 + $0x170] sm:$0xff] }
  0x98   : > { %1166 = vmatpush1.bf16.msra.mxu0 %v4224_v40  ;;  %v745_v40 = vld [vmem:[#allocation3 + $0x70] sm:$0xff] }
  0x99   : > { %4648 = vmatpush3.bf16.msra.mxu1 %v4807_v15  ;;  %1167 = vmatprep.subr.bf16.mxu0 %v4233_v43  ;;  %v4243_v15 = vcombine.high %v780_v12, %v784_v13  ;;  %v4205_v46 = vcombine.high %v741_v38, %v745_v40 }
  0x9a   : > { %4649 = vmatprep.subr.bf16.mxu1 %v5504_v2  ;;  %v4210_v2 = vcombine.low %v748_v60, %v752_v61 }
  0x9c   : > { %1168 = vmatpush1.bf16.msra.mxu0 %v4232_v44 }
  0x9d   : > { %4650 = vmatpush3.bf16.msra.mxu1 %v4808_v16  ;;  %1169 = vmatprep.subr.bf16.mxu0 %v4241_v47  ;;  %v4242_v16 = vcombine.low %v780_v12, %v784_v13  ;;  %v4207_v47 = vcombine.high %v742_v41, %v746_v42  ;;  %v4228_v12 = vcombine.low %v765_v0, %v769_v1 }
  0x9e   : > { %1198 = vmatprep.subr.bf16.mxu1 %v4195_v26  ;;  %v737_v26 = vld [vmem:[#allocation3 + $0x30] sm:$0xff] }
  0xa0   : > { %1170 = vmatpush1.bf16.msra.mxu0 %v4240_v48  ;;  %v749_v48 = vld [vmem:[#allocation3 + $0x90] sm:$0xff] }
  0xa1   : > { %1171 = vmatprep.subr.bf16.mxu0 %v4249_v20  ;;  %v4236_v20 = vcombine.low %v773_v8, %v777_v9 }
  0xa4   : > { %1172 = vmatpush1.bf16.msra.mxu0 %v4248_v22 }
 0x159   : > { %v610_v50 = vpop.f32.mrb[0].mxu0 }
 0x15a   : > { %v611_v51 = vadd.f32 %v4181_v49, %v610_v50  ;;  %v4633_v52 = vpop.f32.mrb[1].mxu0  ;;  %v753_v49 = vld [vmem:[#allocation3 + $0xb0] sm:$0xff]  ;;  %v750_v50 = vld [vmem:[#allocation3 + $0x98] sm:$0xff] }
 0x15b   : > { %v613_v53 = vpop.f32.mrb[2].mxu0  ;;  %v4204_v52 = vcombine.low %v741_v38, %v745_v40  ;;  %v4213_v54 = vcombine.high %v749_v48, %v753_v49  ;;  %v4212_v60 = vcombine.low %v749_v48, %v753_v49  ;;  %v5803_v38 = vld [vmem:[%s6017_s7] sm:$0xff] }
 0x15c   : > { %v616_v56 = vmax.f32 %v611_v51, 0.0  ;;  %v4634_v57 = vpop.f32.mrb[3].mxu0  ;;  %v754_v51 = vld [vmem:[#allocation3 + $0xb8] sm:$0xff]  ;;  %v4206_v53 = vcombine.low %v742_v41, %v746_v42 }
 0x15d   : > { %v4215_v55 = vcombine.high %v750_v50, %v754_v51  ;;  %v761_v57 = vld [vmem:[#allocation3 + $0xf0] sm:$0xff]  ;;  %v4214_v61 = vcombine.low %v750_v50, %v754_v51 }
 0x15e   : > { %v617_v58 = vpack.c.bf16 %v616_v56, %v616_v56  ;;  %v757_v56 = vld [vmem:[#allocation3 + $0xd0] sm:$0xff] }
 0x15f   : > { %v4220_v4 = vcombine.low %v757_v56, %v761_v57 }
 0x160   : > { %4652 = vmatmul.mubr.bf16.vlgmr.msra.gmra.mrb[0].mxu1 %v617_v58  ;;  %v758_v58 = vld [vmem:[#allocation3 + $0xd8] sm:$0xff] }
 0x161   : > { %1199 = vmatpush1.bf16.msra.mxu1 %v4194_v25  ;;  %v733_v25 = vld [vmem:[#allocation3 + $0x10] sm:$0xff]  ;;  %1230 = vmatprep.mubr.bf16.mxu1 %v5507_v33 }
 0x162   : > { %1200 = vmatprep.subr.bf16.mxu1 %v4203_v59  ;;  %v4197_v28 = vcombine.high %v733_v25, %v737_v26  ;;  %v4196_v30 = vcombine.low %v733_v25, %v737_v26  ;;  %v762_v59 = vld [vmem:[#allocation3 + $0xf8] sm:$0xff]  ;;  %v793_v25 = vld [vmem:[#allocation3 + $0x1f0] sm:$0xff] }
 0x163   : > { %v4222_v5 = vcombine.low %v758_v58, %v762_v59  ;;  %v790_v26 = vld [vmem:[#allocation3 + $0x1d8] sm:$0xff] }
 0x164   : > { %1239 = vmatprep.subr.bf16.mxu0 %v4197_v28 }
 0x165   : > { %1201 = vmatpush1.bf16.msra.mxu1 %v4202_v62  ;;  %v4221_v62 = vcombine.high %v757_v56, %v761_v57 }
 0x166   : > { %1202 = vmatprep.subr.bf16.mxu1 %v4211_v63  ;;  %v4223_v63 = vcombine.high %v758_v58, %v762_v59 }
 0x169   : > { %1203 = vmatpush1.bf16.msra.mxu1 %v4210_v2  ;;  %v766_v2 = vld [vmem:[#allocation3 + $0x118] sm:$0xff] }
 0x16a   : > { %1204 = vmatprep.subr.bf16.mxu1 %v4219_v3  ;;  %v770_v3 = vld [vmem:[#allocation3 + $0x138] sm:$0xff] }
 0x16b   : > { %v4230_v13 = vcombine.low %v766_v2, %v770_v3 }
 0x16d   : > { %1205 = vmatpush1.bf16.msra.mxu1 %v4218_v6  ;;  %v4229_v6 = vcombine.high %v765_v0, %v769_v1 }
 0x16e   : > { %1206 = vmatprep.subr.bf16.mxu1 %v4227_v7  ;;  %v4231_v7 = vcombine.high %v766_v2, %v770_v3 }
 0x171   : > { %1207 = vmatpush1.bf16.msra.mxu1 %v4226_v10  ;;  %v774_v10 = vld [vmem:[#allocation3 + $0x158] sm:$0xff] }
 0x172   : > { %1208 = vmatprep.subr.bf16.mxu1 %v4235_v11  ;;  %v778_v11 = vld [vmem:[#allocation3 + $0x178] sm:$0xff] }
 0x173   : > { %v4238_v21 = vcombine.low %v774_v10, %v778_v11 }
 0x175   : > { %1209 = vmatpush1.bf16.msra.mxu1 %v4234_v14  ;;  %v4237_v14 = vcombine.high %v773_v8, %v777_v9 }
 0x176   : > { %1210 = vmatprep.subr.bf16.mxu1 %v4243_v15  ;;  %v4239_v15 = vcombine.high %v774_v10, %v778_v11 }
 0x179   : > { %1211 = vmatpush1.bf16.msra.mxu1 %v4242_v16  ;;  %v781_v16 = vld [vmem:[#allocation3 + $0x190] sm:$0xff] }
 0x17a   : > { %1212 = vmatprep.subr.bf16.mxu1 %v4251_v24  ;;  %v4245_v22 = vcombine.high %v781_v16, %v785_v17  ;;  %v789_v24 = vld [vmem:[#allocation3 + $0x1d0] sm:$0xff]  ;;  %v4244_v28 = vcombine.low %v781_v16, %v785_v17 }
 0x17d   : > { %1213 = vmatpush1.bf16.msra.mxu1 %v4250_v23  ;;  %v4247_v23 = vcombine.high %v782_v18, %v786_v19 }
 0x17e   : > { %1280 = vmatprep.subr.bf16.mxu1 %v4199_v32  ;;  %v4252_v32 = vcombine.low %v789_v24, %v793_v25 }
 0x233   : > { %v723_v35 = vpop.f32.mrb[0].mxu1 }
 0x234   : > { %v724_v36 = vadd.f32 %v4183_v34, %v723_v35  ;;  %v4653_v37 = vpop.f32.mrb[1].mxu1  ;;  %v797_v34 = vlaneseq }
 0x235   : > { %v726_v39 = vpop.f32.mrb[2].mxu1 }
 0x236   : > { %v729_v43 = vmax.f32 %v724_v36, 0.0  ;;  %v4654_v44 = vpop.f32.mrb[3].mxu1  ;;  %v5792_v35 = vshrl.u32 %v797_v34, 7 }
 0x238   : > { %v5786_v45 = vpack.c.bf16 %v729_v43, %v729_v43  ;;  %v5795_v36 = vsub.s32 0, %v5792_v35  ;;  %v5798_v37 = vsub.s32 2, %v5792_v35  ;;  %v5806_v39 = vsub.s32 1, %v5792_v35 }
 0x239   : > { %v5809_v40 = vsub.s32 3, %v5792_v35 }
 0x23a   : > { %1190 = vmatmul.mubr.bf16.vlgmr.msra.gmra.mrb[4].mxu0 %v5786_v45  ;;  %1231 = vmatmul.mubr.bf16.vlgmr.msra.gmra.mrb[4].mxu1 %v5786_v45  ;;  %v800_v41 = vrot.slane %v5803_v38, %v5795_v36  ;;  %v808_v42 = vrot.slane %v5803_v38, %v5798_v37  ;;  %v804_v43 = vrot.slane %v5803_v38, %v5806_v39 }
 0x23b   : > { %1240 = vmatpush1.bf16.msra.mxu0 %v4196_v30  ;;  %1281 = vmatpush1.bf16.msra.mxu1 %v4198_v31  ;;  %v4253_v30 = vcombine.high %v789_v24, %v793_v25  ;;  %v4255_v31 = vcombine.high %v790_v26, %v794_v27  ;;  %v812_v44 = vrot.slane %v5803_v38, %v5809_v40 }
 0x23c   : > { %1241 = vmatprep.subr.bf16.mxu0 %v4205_v46  ;;  %1282 = vmatprep.subr.bf16.mxu1 %v4207_v47 }
 0x23d   : > { %1271 = vmatprep.mubr.bf16.mxu0 %v5507_v33  ;;  %1312 = vmatprep.mubr.bf16.mxu1 %v5507_v33  ;;  %v4254_v33 = vcombine.low %v790_v26, %v794_v27 }
 0x23f   : > { %1242 = vmatpush1.bf16.msra.mxu0 %v4204_v52  ;;  %1283 = vmatpush1.bf16.msra.mxu1 %v4206_v53 }
 0x240   : > { %1243 = vmatprep.subr.bf16.mxu0 %v4213_v54  ;;  %1284 = vmatprep.subr.bf16.mxu1 %v4215_v55 }
 0x243   : > { %1244 = vmatpush1.bf16.msra.mxu0 %v4212_v60  ;;  %1285 = vmatpush1.bf16.msra.mxu1 %v4214_v61 }
 0x244   : > { %1245 = vmatprep.subr.bf16.mxu0 %v4221_v62  ;;  %1286 = vmatprep.subr.bf16.mxu1 %v4223_v63 }
 0x247   : > { %1246 = vmatpush1.bf16.msra.mxu0 %v4220_v4  ;;  %1287 = vmatpush1.bf16.msra.mxu1 %v4222_v5  ;;  %v5508_v4 = vmov 1966171168  }
 0x248   : > { %1247 = vmatprep.subr.bf16.mxu0 %v4229_v6  ;;  %1288 = vmatprep.subr.bf16.mxu1 %v4231_v7  ;;  %v1391_v5 = vunpack.c.l.s4 %v5508_v4 }
 0x24b   : > { %1248 = vmatpush1.bf16.msra.mxu0 %v4228_v12  ;;  %1289 = vmatpush1.bf16.msra.mxu1 %v4230_v13 }
 0x24c   : > { %1249 = vmatprep.subr.bf16.mxu0 %v4237_v14  ;;  %1290 = vmatprep.subr.bf16.mxu1 %v4239_v15  ;;  %v1392_v14 = vunpack.c.0.s8 %v1391_v5 }
 0x24f   : > { %1250 = vmatpush1.bf16.msra.mxu0 %v4236_v20  ;;  %1291 = vmatpush1.bf16.msra.mxu1 %v4238_v21 }
 0x250   : > { %1251 = vmatprep.subr.bf16.mxu0 %v4245_v22  ;;  %1292 = vmatprep.subr.bf16.mxu1 %v4247_v23  ;;  %v1395_v23 = vsub.s32 %v1392_v14, %v5792_v35 }
 0x253   : > { %1252 = vmatpush1.bf16.msra.mxu0 %v4244_v28  ;;  %1293 = vmatpush1.bf16.msra.mxu1 %v4246_v29 }
 0x254   : > { %1253 = vmatprep.subr.bf16.mxu0 %v4253_v30  ;;  %1294 = vmatprep.subr.bf16.mxu1 %v4255_v31  ;;  %v815_v30 = vsub.s32 4, %v5792_v35  ;;  %v823_v31 = vsub.s32 6, %v5792_v35 }
 0x256   : > { %v816_v34 = vrot.slane %v5803_v38, %v815_v30 }
 0x257   : > { %1254 = vmatpush1.bf16.msra.mxu0 %v4252_v32  ;;  %1295 = vmatpush1.bf16.msra.mxu1 %v4254_v33  ;;  %v819_v32 = vsub.s32 5, %v5792_v35  ;;  %v827_v33 = vsub.s32 7, %v5792_v35  ;;  %v5195_v35 = vld [vmem:[#allocation8 + $0x4] ss:$8 sps:$4 sm:$0xff] (!%p4256_p13)  }
 0x25a   : > { %1272 = vmatmul.mubr.bf16.vlgmr.msra.gmra.mrb[8].mxu0 %v5786_v45  ;;  %1313 = vmatmul.mubr.bf16.vlgmr.msra.gmra.mrb[8].mxu1 %v5786_v45 }
 0x30d   : > { %v1191_v45 = vpop.f32.mrb[4].mxu0  ;;  %v1232_v46 = vpop.f32.mrb[4].mxu1 }
 0x30e   : > { %v1192_v47 = vadd.f32 %v1191_v45, %v800_v41  ;;  %v1233_v48 = vadd.f32 %v1232_v46, %v808_v42  ;;  %v1193_v49 = vpop.f32.mrb[5].mxu0  ;;  %v1234_v50 = vpop.f32.mrb[5].mxu1  ;;  %v824_v41 = vrot.slane %v5803_v38, %v823_v31  ;;  %v820_v42 = vrot.slane %v5803_v38, %v819_v32 }
 0x30f   : > { %v1194_v51 = vadd.f32 %v1193_v49, %v804_v43  ;;  %v1235_v52 = vadd.f32 %v1234_v50, %v812_v44  ;;  %v1195_v53 = vpop.f32.mrb[6].mxu0  ;;  %v1236_v54 = vpop.f32.mrb[6].mxu1  ;;  %v828_v43 = vrot.slane %v5803_v38, %v827_v33 }
 0x310   : > { %v1321_v55 = vmax.f32 %v1192_v47, 0.0  ;;  %v1323_v56 = vmax.f32 %v1233_v48, 0.0  ;;  %v1196_v57 = vpop.f32.mrb[7].mxu0  ;;  %v1237_v58 = vpop.f32.mrb[7].mxu1 }
 0x311   : > { %v1322_v59 = vmax.f32 %v1194_v51, 0.0  ;;  %v1324_v60 = vmax.f32 %v1235_v52, 0.0 }
 0x312   : > { %v1330_v61 = vrot.slane %v1321_v55, 4  ;;  %v1342_v62 = vrot.slane %v1323_v56, 4 }
 0x313   : > { %v1336_v63 = vrot.slane %v1322_v59, 4  ;;  %v1348_v0 = vrot.slane %v1324_v60, 4 }
 0x314   : > { %v1331_v1 = vmax.f32 %v1321_v55, %v1330_v61  ;;  %v1343_v2 = vmax.f32 %v1323_v56, %v1342_v62 }
 0x315   : > { %v1337_v3 = vmax.f32 %v1322_v59, %v1336_v63  ;;  %v1349_v6 = vmax.f32 %v1324_v60, %v1348_v0 }
 0x316   : > { %v1332_v7 = vrot.slane %v1331_v1, 2  ;;  %v1344_v8 = vrot.slane %v1343_v2, 2 }
 0x317   : > { %v1338_v9 = vrot.slane %v1337_v3, 2  ;;  %v1350_v10 = vrot.slane %v1349_v6, 2 }
 0x318   : > { %v1333_v11 = vmax.f32 %v1331_v1, %v1332_v7  ;;  %v1345_v12 = vmax.f32 %v1343_v2, %v1344_v8 }
 0x319   : > { %v1339_v13 = vmax.f32 %v1337_v3, %v1338_v9  ;;  %v1351_v15 = vmax.f32 %v1349_v6, %v1350_v10 }
 0x31a   : > { %v1334_v16 = vrot.slane %v1333_v11, 1  ;;  %v1346_v17 = vrot.slane %v1345_v12, 1 }
 0x31b   : > { %v1340_v18 = vrot.slane %v1339_v13, 1  ;;  %v1352_v19 = vrot.slane %v1351_v15, 1 }
 0x31c   : > { %v1335_v20 = vmax.f32 %v1333_v11, %v1334_v16  ;;  %v1347_v21 = vmax.f32 %v1345_v12, %v1346_v17 }
 0x31d   : > { %v1341_v22 = vmax.f32 %v1339_v13, %v1340_v18  ;;  %v1353_v24 = vmax.f32 %v1351_v15, %v1352_v19 }
 0x31f   : > { %v1386_v25 = vcombine.low %v1335_v20, %v1341_v22  ;;  %v1387_v26 = vcombine.low %v1347_v21, %v1353_v24 }
 0x321   : > { %v1396_v27 = vrot.slane %v1386_v25, %v1395_v23  ;;  %v1403_v28 = vrot.slane %v1387_v26, %v1395_v23 }
 0x323   : > { %v1418_v29 = vcombine.low %v1396_v27, %v1403_v28  ;;  %v1329_v27 = vld [vmem:[#allocation2] sm:$0xff] }
 0x325   : > { %v1426_v25 = vrot.slane %v1418_v29, %v1395_v23  ;;  %v4821_v29 = vld [vmem:[#allocation6 + $0x44] ss:$16 sps:$4 sm:$0xff] (!%p4256_p13)  }
 0x32d   : > { %v1273_v44 = vpop.f32.mrb[8].mxu0  ;;  %v1314_v45 = vpop.f32.mrb[8].mxu1 }
 0x32e   : > { %v1274_v46 = vadd.f32 %v1273_v44, %v816_v34  ;;  %v1315_v47 = vadd.f32 %v1314_v45, %v824_v41  ;;  %v1275_v48 = vpop.f32.mrb[9].mxu0  ;;  %v1316_v49 = vpop.f32.mrb[9].mxu1  ;;  %v4809_v41 = vld [vmem:[#allocation6 + $0x4] ss:$16 sps:$4 sm:$0xff] (!%p4256_p13)   ;;  %v4814_v44 = vld [vmem:[#allocation6 + $0x200] ss:$16 sps:$4 sm:$0xff] (!%p4256_p13)  }
 0x32f   : > { %v1276_v50 = vadd.f32 %v1275_v48, %v820_v42  ;;  %v1317_v51 = vadd.f32 %v1316_v49, %v828_v43  ;;  %v1277_v52 = vpop.f32.mrb[10].mxu0  ;;  %v1318_v53 = vpop.f32.mrb[10].mxu1  ;;  %v4811_v42 = vld [vmem:[#allocation6 + $0x204] ss:$16 sps:$4 sm:$0xff] (!%p4256_p13)   ;;  %3050 = vmatprep.subr.bf16.mxu1 (!%p4256_p13), %v4809_v41  ;;  %v4813_v43 = vld [vmem:[#allocation6] ss:$16 sps:$4 sm:$0xff] (!%p4256_p13)  }
 0x330   : > { %v1325_v54 = vmax.f32 %v1274_v46, 0.0  ;;  %v1327_v55 = vmax.f32 %v1315_v47, 0.0  ;;  %v1278_v56 = vpop.f32.mrb[11].mxu0  ;;  %v1319_v57 = vpop.f32.mrb[11].mxu1  ;;  %3091 = vmatprep.subr.bf16.mxu0 (!%p4256_p13), %v4811_v42  ;;  %v4815_v45 = vld [vmem:[#allocation6 + $0x24] ss:$16 sps:$4 sm:$0xff] (!%p4256_p13)   ;;  %3051 = vmatpush1.bf16.msra.mxu1 (!%p4256_p13), %v4813_v43 }
 0x331   : > { %v1326_v58 = vmax.f32 %v1276_v50, 0.0  ;;  %v1328_v59 = vmax.f32 %v1317_v51, 0.0  ;;  %3092 = vmatpush1.bf16.msra.mxu0 (!%p4256_p13), %v4814_v44  ;;  %v4817_v46 = vld [vmem:[#allocation6 + $0x224] ss:$16 sps:$4 sm:$0xff] (!%p4256_p13)   ;;  %v4819_v47 = vld [vmem:[#allocation6 + $0x20] ss:$16 sps:$4 sm:$0xff] (!%p4256_p13)   ;;  %3052 = vmatprep.subr.bf16.mxu1 (!%p4256_p13), %v4815_v45 }
 0x332   : > { %v1354_v60 = vrot.slane %v1325_v54, 4  ;;  %v1366_v61 = vrot.slane %v1327_v55, 4  ;;  %3093 = vmatprep.subr.bf16.mxu0 (!%p4256_p13), %v4817_v46  ;;  %v4823_v48 = vld [vmem:[#allocation6 + $0x244] ss:$16 sps:$4 sm:$0xff] (!%p4256_p13)   ;;  %v4825_v49 = vld [vmem:[#allocation6 + $0x40] ss:$16 sps:$4 sm:$0xff] (!%p4256_p13)  }
 0x333   : > { %v1360_v62 = vrot.slane %v1326_v58, 4  ;;  %v1372_v38 = vrot.slane %v1328_v59, 4  ;;  %v4826_v50 = vld [vmem:[#allocation6 + $0x240] ss:$16 sps:$4 sm:$0xff] (!%p4256_p13)   ;;  %v4827_v51 = vld [vmem:[#allocation6 + $0x64] ss:$16 sps:$4 sm:$0xff] (!%p4256_p13)  }
 0x334   : > { %v1355_v63 = vmax.f32 %v1325_v54, %v1354_v60  ;;  %v1367_v0 = vmax.f32 %v1327_v55, %v1366_v61  ;;  %3053 = vmatpush1.bf16.msra.mxu1 (!%p4256_p13), %v4819_v47  ;;  %v4829_v52 = vld [vmem:[#allocation6 + $0x264] ss:$16 sps:$4 sm:$0xff] (!%p4256_p13)   ;;  %v4831_v53 = vld [vmem:[#allocation6 + $0x60] ss:$16 sps:$4 sm:$0xff] (!%p4256_p13)  }
 0x335   : > { %v1361_v1 = vmax.f32 %v1326_v58, %v1360_v62  ;;  %v1373_v2 = vmax.f32 %v1328_v59, %v1372_v38  ;;  %3054 = vmatprep.subr.bf16.mxu1 (!%p4256_p13), %v4821_v29  ;;  %v4832_v54 = vld [vmem:[#allocation6 + $0x260] ss:$16 sps:$4 sm:$0xff] (!%p4256_p13)   ;;  %v4833_v55 = vld [vmem:[#allocation6 + $0x84] ss:$16 sps:$4 sm:$0xff] (!%p4256_p13)  }
 0x336   : > { %v1356_v3 = vrot.slane %v1355_v63, 2  ;;  %v1368_v4 = vrot.slane %v1367_v0, 2  ;;  %v4835_v56 = vld [vmem:[#allocation6 + $0x284] ss:$16 sps:$4 sm:$0xff] (!%p4256_p13)   ;;  %v4837_v57 = vld [vmem:[#allocation6 + $0x80] ss:$16 sps:$4 sm:$0xff] (!%p4256_p13)  }
 0x337   : > { %v1362_v5 = vrot.slane %v1361_v1, 2  ;;  %v1374_v6 = vrot.slane %v1373_v2, 2  ;;  %v4838_v58 = vld [vmem:[#allocation6 + $0x280] ss:$16 sps:$4 sm:$0xff] (!%p4256_p13)   ;;  %v4839_v59 = vld [vmem:[#allocation6 + $0xa4] ss:$16 sps:$4 sm:$0xff] (!%p4256_p13)  }
 0x338   : > { %v1357_v7 = vmax.f32 %v1355_v63, %v1356_v3  ;;  %v1369_v8 = vmax.f32 %v1367_v0, %v1368_v4  ;;  %3055 = vmatpush1.bf16.msra.mxu1 (!%p4256_p13), %v4825_v49  ;;  %v4841_v60 = vld [vmem:[#allocation6 + $0x2a4] ss:$16 sps:$4 sm:$0xff] (!%p4256_p13)   ;;  %v4843_v61 = vld [vmem:[#allocation6 + $0xa0] ss:$16 sps:$4 sm:$0xff] (!%p4256_p13)  }
 0x339   : > { %v1363_v9 = vmax.f32 %v1361_v1, %v1362_v5  ;;  %v1375_v10 = vmax.f32 %v1373_v2, %v1374_v6  ;;  %3056 = vmatprep.subr.bf16.mxu1 (!%p4256_p13), %v4827_v51  ;;  %v4844_v62 = vld [vmem:[#allocation6 + $0x2a0] ss:$16 sps:$4 sm:$0xff] (!%p4256_p13)   ;;  %v4845_v38 = vld [vmem:[#allocation6 + $0xc4] ss:$16 sps:$4 sm:$0xff] (!%p4256_p13)  }
 0x33a   : > { %v1358_v11 = vrot.slane %v1357_v7, 1  ;;  %v1370_v12 = vrot.slane %v1369_v8, 1  ;;  %v4847_v63 = vld [vmem:[#allocation6 + $0x2c4] ss:$16 sps:$4 sm:$0xff] (!%p4256_p13)   ;;  %v4849_v0 = vld [vmem:[#allocation6 + $0xc0] ss:$16 sps:$4 sm:$0xff] (!%p4256_p13)  }
 0x33b   : > { %v1364_v13 = vrot.slane %v1363_v9, 1  ;;  %v1376_v14 = vrot.slane %v1375_v10, 1  ;;  %v4850_v1 = vld [vmem:[#allocation6 + $0x2c0] ss:$16 sps:$4 sm:$0xff] (!%p4256_p13)   ;;  %v4851_v2 = vld [vmem:[#allocation6 + $0xe4] ss:$16 sps:$4 sm:$0xff] (!%p4256_p13)  }
 0x33c   : > { %v1359_v15 = vmax.f32 %v1357_v7, %v1358_v11  ;;  %v1371_v16 = vmax.f32 %v1369_v8, %v1370_v12  ;;  %3057 = vmatpush1.bf16.msra.mxu1 (!%p4256_p13), %v4831_v53  ;;  %v4853_v3 = vld [vmem:[#allocation6 + $0x2e4] ss:$16 sps:$4 sm:$0xff] (!%p4256_p13)   ;;  %v4855_v4 = vld [vmem:[#allocation6 + $0xe0] ss:$16 sps:$4 sm:$0xff] (!%p4256_p13)  }
 0x33d   : > { %v1365_v17 = vmax.f32 %v1363_v9, %v1364_v13  ;;  %v1377_v18 = vmax.f32 %v1375_v10, %v1376_v14  ;;  %3058 = vmatprep.subr.bf16.mxu1 (!%p4256_p13), %v4833_v55  ;;  %v4856_v5 = vld [vmem:[#allocation6 + $0x2e0] ss:$16 sps:$4 sm:$0xff] (!%p4256_p13)   ;;  %v4857_v6 = vld [vmem:[#allocation6 + $0x104] ss:$16 sps:$4 sm:$0xff] (!%p4256_p13)  }
 0x33e   : > { %v4859_v7 = vld [vmem:[#allocation6 + $0x304] ss:$16 sps:$4 sm:$0xff] (!%p4256_p13)   ;;  %v4861_v8 = vld [vmem:[#allocation6 + $0x100] ss:$16 sps:$4 sm:$0xff] (!%p4256_p13)  }
 0x33f   : > { %v1388_v19 = vcombine.low %v1359_v15, %v1365_v17  ;;  %v1389_v20 = vcombine.low %v1371_v16, %v1377_v18  ;;  %v4862_v9 = vld [vmem:[#allocation6 + $0x300] ss:$16 sps:$4 sm:$0xff] (!%p4256_p13)   ;;  %v4863_v10 = vld [vmem:[#allocation6 + $0x124] ss:$16 sps:$4 sm:$0xff] (!%p4256_p13)  }
 0x340   : > { %3059 = vmatpush1.bf16.msra.mxu1 (!%p4256_p13), %v4837_v57  ;;  %v4865_v11 = vld [vmem:[#allocation6 + $0x324] ss:$16 sps:$4 sm:$0xff] (!%p4256_p13)   ;;  %v4867_v12 = vld [vmem:[#allocation6 + $0x120] ss:$16 sps:$4 sm:$0xff] (!%p4256_p13)  }
 0x341   : > { %v1410_v21 = vrot.slane %v1388_v19, %v1395_v23  ;;  %v1417_v22 = vrot.slane %v1389_v20, %v1395_v23  ;;  %3060 = vmatprep.subr.bf16.mxu1 (!%p4256_p13), %v4839_v59  ;;  %v4868_v13 = vld [vmem:[#allocation6 + $0x320] ss:$16 sps:$4 sm:$0xff] (!%p4256_p13)   ;;  %v4869_v14 = vld [vmem:[#allocation6 + $0x144] ss:$16 sps:$4 sm:$0xff] (!%p4256_p13)  }
 0x342   : > { %v4871_v15 = vld [vmem:[#allocation6 + $0x344] ss:$16 sps:$4 sm:$0xff] (!%p4256_p13)   ;;  %v4873_v16 = vld [vmem:[#allocation6 + $0x140] ss:$16 sps:$4 sm:$0xff] (!%p4256_p13)  }
 0x343   : > { %v1419_v24 = vcombine.low %v1410_v21, %v1417_v22  ;;  %v4874_v17 = vld [vmem:[#allocation6 + $0x340] ss:$16 sps:$4 sm:$0xff] (!%p4256_p13)   ;;  %v4875_v18 = vld [vmem:[#allocation6 + $0x164] ss:$16 sps:$4 sm:$0xff] (!%p4256_p13)  }
 0x344   : > { %3061 = vmatpush1.bf16.msra.mxu1 (!%p4256_p13), %v4843_v61  ;;  %v4877_v19 = vld [vmem:[#allocation6 + $0x364] ss:$16 sps:$4 sm:$0xff] (!%p4256_p13)   ;;  %v4879_v21 = vld [vmem:[#allocation6 + $0x160] ss:$16 sps:$4 sm:$0xff] (!%p4256_p13)   ;;  %v4908_v61 = vld [vmem:[#allocation6 + $0x8] ss:$16 sps:$4 sm:$0xff] (!%p4256_p13)  }
 0x345   : > { %v1433_v26 = vrot.slane %v1419_v24, %v1395_v23  ;;  %1441 = sbr.rel (%p4256_p13) target bundleno = 1793 (0x701), region = 96  ;;  %v4820_v23 = vld [vmem:[#allocation6 + $0x220] ss:$16 sps:$4 sm:$0xff] (!%p4256_p13)   ;;  %3062 = vmatprep.subr.bf16.mxu1 (!%p4256_p13), %v4845_v38  ;;  %v4887_v43 = vld [vmem:[#allocation6 + $0x1a4] ss:$16 sps:$4 sm:$0xff] (!%p4256_p13)  }
 0x346   : > { %3094 = vmatpush1.bf16.msra.mxu0 (!%p4256_p13), %v4820_v23  ;;  %v4885_v41 = vld [vmem:[#allocation6 + $0x180] ss:$16 sps:$4 sm:$0xff] (!%p4256_p13)   ;;  %v4889_v44 = vld [vmem:[#allocation6 + $0x3a4] ss:$16 sps:$4 sm:$0xff] (!%p4256_p13)   ;;  %v4916_v38 = vld [vmem:[#allocation6 + $0x2c] ss:$16 sps:$4 sm:$0xff] (!%p4256_p13)  }
 0x347   : > { %v1434_v28 = vcombine.low %v1426_v25, %v1433_v26  ;;  %3095 = vmatprep.subr.bf16.mxu0 (!%p4256_p13), %v4823_v48  ;;  %v4880_v25 = vld [vmem:[#allocation6 + $0x360] ss:$16 sps:$4 sm:$0xff] (!%p4256_p13)   ;;  %v4881_v26 = vld [vmem:[#allocation6 + $0x184] ss:$16 sps:$4 sm:$0xff] (!%p4256_p13)  }
 0x348   : > { %3063 = vmatpush1.bf16.msra.mxu1 (!%p4256_p13), %v4849_v0  ;;  %v4886_v42 = vld [vmem:[#allocation6 + $0x380] ss:$16 sps:$4 sm:$0xff] (!%p4256_p13)   ;;  %v4893_v47 = vld [vmem:[#allocation6 + $0x1c4] ss:$16 sps:$4 sm:$0xff] (!%p4256_p13)  }
 0x349   : > { %v1436_v34 = vmax.f32 %v1329_v27, %v1434_v28  ;;  %3064 = vmatprep.subr.bf16.mxu1 (!%p4256_p13), %v4851_v2  ;;  %v4883_v27 = vld [vmem:[#allocation6 + $0x384] ss:$16 sps:$4 sm:$0xff] (!%p4256_p13)   ;;  %v4891_v45 = vld [vmem:[#allocation6 + $0x1a0] ss:$16 sps:$4 sm:$0xff] (!%p4256_p13)   ;;  %v4922_v2 = vld [vmem:[#allocation6 + $0x4c] ss:$16 sps:$4 sm:$0xff] (!%p4256_p13)  }
 0x34a   : > { %3096 = vmatpush1.bf16.msra.mxu0 (!%p4256_p13), %v4826_v50  ;;  %v4892_v46 = vld [vmem:[#allocation6 + $0x3a0] ss:$16 sps:$4 sm:$0xff] (!%p4256_p13)   ;;  %v4895_v23 = vld [vmem:[#allocation6 + $0x3c4] ss:$16 sps:$4 sm:$0xff] (!%p4256_p13)  }
 0x34b   : > { %1437 = vst [vmem:[#allocation2] sm:$0xff] %v1436_v34  ;;  %3097 = vmatprep.subr.bf16.mxu0 (!%p4256_p13), %v4829_v52  ;;  %v4897_v29 = vld [vmem:[#allocation6 + $0x1c0] ss:$16 sps:$4 sm:$0xff] (!%p4256_p13)   ;;  %v4899_v49 = vld [vmem:[#allocation6 + $0x1e4] ss:$16 sps:$4 sm:$0xff] (!%p4256_p13)  }
 0x34c   : > { %3065 = vmatpush1.bf16.msra.mxu1 %v4855_v4  ;;  %v4898_v48 = vld [vmem:[#allocation6 + $0x3c0] ss:$16 sps:$4 sm:$0xff]   ;;  %v4901_v50 = vld [vmem:[#allocation6 + $0x3e4] ss:$16 sps:$4 sm:$0xff]   ;;  %v4920_v4 = vld [vmem:[#allocation6 + $0x48] ss:$16 sps:$4 sm:$0xff]  }
 0x34d   : > { %3066 = vmatprep.subr.bf16.mxu1 %v4857_v6  ;;  %v4903_v51 = vld [vmem:[#allocation6 + $0x1e0] ss:$16 sps:$4 sm:$0xff]   ;;  %v4907_v55 = vld [vmem:[#allocation6 + $0x404] ss:$16 sps:$4 sm:$0xff]   ;;  %v4928_v6 = vld [vmem:[#allocation6 + $0x6c] ss:$16 sps:$4 sm:$0xff]  }
 0x34e   : > { %3098 = vmatpush1.bf16.msra.mxu0 %v4832_v54  ;;  %v4904_v54 = vld [vmem:[#allocation6 + $0x3e0] ss:$16 sps:$4 sm:$0xff]  }
 0x34f   : > { %3099 = vmatprep.subr.bf16.mxu0 %v4835_v56  ;;  %v4910_v56 = vld [vmem:[#allocation6 + $0xc] ss:$16 sps:$4 sm:$0xff]   ;;  %v4905_v59 = vld [vmem:[#allocation6 + $0x400] ss:$16 sps:$4 sm:$0xff]  }
 0x350   : > { %3067 = vmatpush1.bf16.msra.mxu1 %v4861_v8  ;;  %v4911_v0 = vld [vmem:[#allocation6 + $0x420] ss:$16 sps:$4 sm:$0xff]   ;;  %v4926_v8 = vld [vmem:[#allocation6 + $0x68] ss:$16 sps:$4 sm:$0xff]  }
 0x351   : > { %3068 = vmatprep.subr.bf16.mxu1 %v4863_v10  ;;  %v4934_v10 = vld [vmem:[#allocation6 + $0x8c] ss:$16 sps:$4 sm:$0xff]  }
 0x352   : > { %3100 = vmatpush1.bf16.msra.mxu0 %v4838_v58  ;;  %v5837_v20 = vld [vmem:[#allocation2] sm:$0xff] }
 0x353   : > { %3101 = vmatprep.subr.bf16.mxu0 %v4841_v60  ;;  %v1451_v22 = vrot.slane %v5837_v20, %v5806_v39  ;;  %v1459_v24 = vrot.slane %v5837_v20, %v5809_v40  ;;  %v1447_v52 = vrot.slane %v5837_v20, %v5795_v36  ;;  %v1455_v53 = vrot.slane %v5837_v20, %v5798_v37 }
 0x354   : > { %3069 = vmatpush1.bf16.msra.mxu1 %v4867_v12  ;;  %v1467_v57 = vrot.slane %v5837_v20, %v819_v32  ;;  %v4914_v32 = vld [vmem:[#allocation6 + $0x28] ss:$16 sps:$4 sm:$0xff]  }
 0x355   : > { %3070 = vmatprep.subr.bf16.mxu1 %v4869_v14  ;;  %v1485_v28 = vpack.c.bf16 %v1451_v22, %v1451_v22  ;;  %v5843_v34 = vpack.c.bf16 %v1459_v24, %v1459_v24  ;;  %v5853_v58 = vpack.c.bf16 %v1447_v52, %v1447_v52  ;;  %v5855_v60 = vpack.c.bf16 %v1455_v53, %v1455_v53  ;;  %v4932_v12 = vld [vmem:[#allocation6 + $0x88] ss:$16 sps:$4 sm:$0xff]   ;;  %v4940_v14 = vld [vmem:[#allocation6 + $0xac] ss:$16 sps:$4 sm:$0xff]   ;;  %v4949_v22 = vld [vmem:[#allocation6 + $0x4e4] ss:$16 sps:$4 sm:$0xff]  }
 0x356   : > { %3102 = vmatpush1.bf16.msra.mxu0 %v4844_v62  ;;  %v4913_v62 = vld [vmem:[#allocation6 + $0x424] ss:$16 sps:$4 sm:$0xff]   ;;  %v4952_v24 = vld [vmem:[#allocation6 + $0xec] ss:$16 sps:$4 sm:$0xff]   ;;  %v4974_v52 = vld [vmem:[#allocation6 + $0x168] ss:$16 sps:$4 sm:$0xff]  }
 0x357   : > { %3103 = vmatprep.subr.bf16.mxu0 %v4847_v63  ;;  %3082 = vmatprep.mubr.bf16.mxu1 %v1485_v28  ;;  %v5857_v63 = vpack.c.bf16 %v1467_v57, %v1467_v57  ;;  %v4979_v53 = vld [vmem:[#allocation6 + $0x584] ss:$16 sps:$4 sm:$0xff]  }
 0x358   : > { %3071 = vmatpush1.bf16.msra.mxu1 %v4873_v16  ;;  %3123 = vmatprep.mubr.bf16.mxu0 %v5843_v34  ;;  %v4938_v16 = vld [vmem:[#allocation6 + $0xa8] ss:$16 sps:$4 sm:$0xff]   ;;  %v4985_v57 = vld [vmem:[#allocation6 + $0x5a4] ss:$16 sps:$4 sm:$0xff]  }
 0x359   : > { %3072 = vmatprep.subr.bf16.mxu1 %v4875_v18  ;;  %v4946_v18 = vld [vmem:[#allocation6 + $0xcc] ss:$16 sps:$4 sm:$0xff]  }
 0x35a   : > { %3104 = vmatpush1.bf16.msra.mxu0 %v4850_v1  ;;  %v4919_v1 = vld [vmem:[#allocation6 + $0x444] ss:$16 sps:$4 sm:$0xff]  }
 0x35b   : > { %3105 = vmatprep.subr.bf16.mxu0 %v4853_v3  ;;  %v4917_v3 = vld [vmem:[#allocation6 + $0x440] ss:$16 sps:$4 sm:$0xff]  }
 0x35c   : > { %3073 = vmatpush1.bf16.msra.mxu1 %v4879_v21  ;;  %v4944_v21 = vld [vmem:[#allocation6 + $0xc8] ss:$16 sps:$4 sm:$0xff]  }
 0x35d   : > { %3074 = vmatprep.subr.bf16.mxu1 %v4881_v26  ;;  %v4950_v26 = vld [vmem:[#allocation6 + $0xe8] ss:$16 sps:$4 sm:$0xff]  }
 0x35e   : > { %3106 = vmatpush1.bf16.msra.mxu0 %v4856_v5  ;;  %v4925_v5 = vld [vmem:[#allocation6 + $0x464] ss:$16 sps:$4 sm:$0xff]  }
 0x35f   : > { %3107 = vmatprep.subr.bf16.mxu0 %v4859_v7  ;;  %v4923_v7 = vld [vmem:[#allocation6 + $0x460] ss:$16 sps:$4 sm:$0xff]  }
 0x360   : > { %3075 = vmatpush1.bf16.msra.mxu1 %v4885_v41  ;;  %v4953_v41 = vld [vmem:[#allocation6 + $0x500] ss:$16 sps:$4 sm:$0xff]  }
 0x361   : > { %3076 = vmatprep.subr.bf16.mxu1 %v4887_v43  ;;  %v4961_v43 = vld [vmem:[#allocation6 + $0x524] ss:$16 sps:$4 sm:$0xff]  }
 0x362   : > { %3108 = vmatpush1.bf16.msra.mxu0 %v4862_v9  ;;  %v4931_v9 = vld [vmem:[#allocation6 + $0x484] ss:$16 sps:$4 sm:$0xff]  }
 0x363   : > { %3109 = vmatprep.subr.bf16.mxu0 %v4865_v11  ;;  %v4929_v11 = vld [vmem:[#allocation6 + $0x480] ss:$16 sps:$4 sm:$0xff]  }
 0x364   : > { %3077 = vmatpush1.bf16.msra.mxu1 %v4891_v45  ;;  %v4959_v45 = vld [vmem:[#allocation6 + $0x520] ss:$16 sps:$4 sm:$0xff]  }
 0x365   : > { %3078 = vmatprep.subr.bf16.mxu1 %v4893_v47  ;;  %v4967_v47 = vld [vmem:[#allocation6 + $0x544] ss:$16 sps:$4 sm:$0xff]  }
 0x366   : > { %3110 = vmatpush1.bf16.msra.mxu0 %v4868_v13  ;;  %v4937_v13 = vld [vmem:[#allocation6 + $0x4a4] ss:$16 sps:$4 sm:$0xff]  }
 0x367   : > { %3111 = vmatprep.subr.bf16.mxu0 %v4871_v15  ;;  %v4935_v15 = vld [vmem:[#allocation6 + $0x4a0] ss:$16 sps:$4 sm:$0xff]  }
 0x368   : > { %3079 = vmatpush1.bf16.msra.mxu1 %v4897_v29  ;;  %v4965_v29 = vld [vmem:[#allocation6 + $0x540] ss:$16 sps:$4 sm:$0xff]  }
 0x369   : > { %3080 = vmatprep.subr.bf16.mxu1 %v4899_v49  ;;  %v4973_v49 = vld [vmem:[#allocation6 + $0x564] ss:$16 sps:$4 sm:$0xff]  }
 0x36a   : > { %3112 = vmatpush1.bf16.msra.mxu0 %v4874_v17  ;;  %v4943_v17 = vld [vmem:[#allocation6 + $0x4c4] ss:$16 sps:$4 sm:$0xff]  }
 0x36b   : > { %3113 = vmatprep.subr.bf16.mxu0 %v4877_v19  ;;  %v4941_v19 = vld [vmem:[#allocation6 + $0x4c0] ss:$16 sps:$4 sm:$0xff]  }
 0x36c   : > { %3081 = vmatpush1.bf16.msra.mxu1 %v4903_v51  ;;  %v4971_v51 = vld [vmem:[#allocation6 + $0x560] ss:$16 sps:$4 sm:$0xff]  }
 0x36d   : > { %3214 = vmatprep.subr.bf16.mxu1 %v4910_v56  ;;  %v4980_v56 = vld [vmem:[#allocation6 + $0x188] ss:$16 sps:$4 sm:$0xff]  }
 0x36e   : > { %3114 = vmatpush1.bf16.msra.mxu0 %v4880_v25  ;;  %v4947_v25 = vld [vmem:[#allocation6 + $0x4e0] ss:$16 sps:$4 sm:$0xff]  }
 0x36f   : > { %3115 = vmatprep.subr.bf16.mxu0 %v4883_v27  ;;  %3083 = vmatmul.mubr.bf16.vlgmr.msra.gmra.mrb[0].mxu1 %v5853_v58  ;;  %v4955_v27 = vld [vmem:[#allocation6 + $0x504] ss:$16 sps:$4 sm:$0xff]  }
 0x370   : > { %3215 = vmatpush1.bf16.msra.mxu1 %v4908_v61  ;;  %3246 = vmatprep.mubr.bf16.mxu1 %v1485_v28  ;;  %v4958_v28 = vld [vmem:[#allocation6 + $0x10c] ss:$16 sps:$4 sm:$0xff]   ;;  %v4983_v61 = vld [vmem:[#allocation6 + $0x5a0] ss:$16 sps:$4 sm:$0xff]  }
 0x371   : > { %3216 = vmatprep.subr.bf16.mxu1 %v4916_v38  ;;  %v4991_v38 = vld [vmem:[#allocation6 + $0x5c4] ss:$16 sps:$4 sm:$0xff]  }
 0x372   : > { %3116 = vmatpush1.bf16.msra.mxu0 %v4886_v42  ;;  %v4956_v42 = vld [vmem:[#allocation6 + $0x108] ss:$16 sps:$4 sm:$0xff]  }
 0x373   : > { %3117 = vmatprep.subr.bf16.mxu0 %v4889_v44  ;;  %v4964_v44 = vld [vmem:[#allocation6 + $0x12c] ss:$16 sps:$4 sm:$0xff]  }
 0x374   : > { %3217 = vmatpush1.bf16.msra.mxu1 %v4914_v32  ;;  %v4989_v32 = vld [vmem:[#allocation6 + $0x5c0] ss:$16 sps:$4 sm:$0xff]  }
 0x375   : > { %3218 = vmatprep.subr.bf16.mxu1 %v4922_v2  ;;  %v4997_v2 = vld [vmem:[#allocation6 + $0x5e4] ss:$16 sps:$4 sm:$0xff]  }
 0x376   : > { %3118 = vmatpush1.bf16.msra.mxu0 %v4892_v46  ;;  %v4962_v46 = vld [vmem:[#allocation6 + $0x128] ss:$16 sps:$4 sm:$0xff]  }
 0x377   : > { %3119 = vmatprep.subr.bf16.mxu0 %v4895_v23  ;;  %v4970_v23 = vld [vmem:[#allocation6 + $0x14c] ss:$16 sps:$4 sm:$0xff]  }
 0x378   : > { %3219 = vmatpush1.bf16.msra.mxu1 %v4920_v4  ;;  %v4995_v4 = vld [vmem:[#allocation6 + $0x5e0] ss:$16 sps:$4 sm:$0xff]  }
 0x379   : > { %3220 = vmatprep.subr.bf16.mxu1 %v4928_v6  ;;  %v4998_v6 = vld [vmem:[#allocation6 + $0x1e8] ss:$16 sps:$4 sm:$0xff]  }
 0x37a   : > { %3120 = vmatpush1.bf16.msra.mxu0 %v4898_v48  ;;  %v4968_v48 = vld [vmem:[#allocation6 + $0x148] ss:$16 sps:$4 sm:$0xff]  }
 0x37b   : > { %3121 = vmatprep.subr.bf16.mxu0 %v4901_v50  ;;  %v4976_v50 = vld [vmem:[#allocation6 + $0x16c] ss:$16 sps:$4 sm:$0xff]  }
 0x37c   : > { %3221 = vmatpush1.bf16.msra.mxu1 %v4926_v8  ;;  %v5006_v8 = vld [vmem:[#allocation6 + $0x20c] ss:$16 sps:$4 sm:$0xff]  }
 0x37d   : > { %3222 = vmatprep.subr.bf16.mxu1 %v4934_v10  ;;  %v5001_v10 = vld [vmem:[#allocation6 + $0x600] ss:$16 sps:$4 sm:$0xff]  }
 0x37e   : > { %3122 = vmatpush1.bf16.msra.mxu0 %v4904_v54  ;;  %v4982_v54 = vld [vmem:[#allocation6 + $0x18c] ss:$16 sps:$4 sm:$0xff]  }
 0x37f   : > { %3132 = vmatprep.subr.bf16.mxu0 %v4907_v55  ;;  %v4977_v55 = vld [vmem:[#allocation6 + $0x580] ss:$16 sps:$4 sm:$0xff]  }
 0x380   : > { %3223 = vmatpush1.bf16.msra.mxu1 %v4932_v12  ;;  %v5004_v12 = vld [vmem:[#allocation6 + $0x208] ss:$16 sps:$4 sm:$0xff]  }
 0x381   : > { %3124 = vmatmul.mubr.bf16.vlgmr.msra.gmra.mrb[0].mxu0 %v5855_v60  ;;  %3224 = vmatprep.subr.bf16.mxu1 %v4940_v14 }
 0x382   : > { %3133 = vmatpush1.bf16.msra.mxu0 %v4905_v59  ;;  %3164 = vmatprep.mubr.bf16.mxu0 %v5857_v63  ;;  %v4988_v59 = vld [vmem:[#allocation6 + $0x1ac] ss:$16 sps:$4 sm:$0xff]  }
 0x383   : > { %3134 = vmatprep.subr.bf16.mxu0 %v4913_v62  ;;  %v4986_v62 = vld [vmem:[#allocation6 + $0x1a8] ss:$16 sps:$4 sm:$0xff]  }
 0x384   : > { %3225 = vmatpush1.bf16.msra.mxu1 %v4938_v16  ;;  %v5018_v16 = vld [vmem:[#allocation6 + $0x24c] ss:$16 sps:$4 sm:$0xff]  }
 0x385   : > { %3226 = vmatprep.subr.bf16.mxu1 %v4946_v18  ;;  %v5016_v18 = vld [vmem:[#allocation6 + $0x248] ss:$16 sps:$4 sm:$0xff]  }
 0x386   : > { %3135 = vmatpush1.bf16.msra.mxu0 %v4911_v0  ;;  %v4994_v0 = vld [vmem:[#allocation6 + $0x1cc] ss:$16 sps:$4 sm:$0xff]  }
 0x387   : > { %3136 = vmatprep.subr.bf16.mxu0 %v4919_v1  ;;  %v4992_v1 = vld [vmem:[#allocation6 + $0x1c8] ss:$16 sps:$4 sm:$0xff]  }
 0x388   : > { %3227 = vmatpush1.bf16.msra.mxu1 %v4944_v21  ;;  %v5019_v21 = vld [vmem:[#allocation6 + $0x660] ss:$16 sps:$4 sm:$0xff]  }
 0x389   : > { %3228 = vmatprep.subr.bf16.mxu1 %v4952_v24  ;;  %v5027_v24 = vld [vmem:[#allocation6 + $0x684] ss:$16 sps:$4 sm:$0xff]  }
 0x38a   : > { %3137 = vmatpush1.bf16.msra.mxu0 %v4917_v3  ;;  %v5000_v3 = vld [vmem:[#allocation6 + $0x1ec] ss:$16 sps:$4 sm:$0xff]  }
 0x38b   : > { %3138 = vmatprep.subr.bf16.mxu0 %v4925_v5  ;;  %v1463_v5 = vrot.slane %v5837_v20, %v815_v30  ;;  %v5009_v30 = vld [vmem:[#allocation6 + $0x624] ss:$16 sps:$4 sm:$0xff]  }
 0x38c   : > { %3229 = vmatpush1.bf16.msra.mxu1 %v4950_v26  ;;  %v5025_v26 = vld [vmem:[#allocation6 + $0x680] ss:$16 sps:$4 sm:$0xff]  }
 0x38d   : > { %3230 = vmatprep.subr.bf16.mxu1 %v4958_v28  ;;  %v5036_v28 = vld [vmem:[#allocation6 + $0x2ac] ss:$16 sps:$4 sm:$0xff]  }
 0x38e   : > { %3139 = vmatpush1.bf16.msra.mxu0 %v4923_v7  ;;  %v5003_v7 = vld [vmem:[#allocation6 + $0x604] ss:$16 sps:$4 sm:$0xff]  }
 0x38f   : > { %3140 = vmatprep.subr.bf16.mxu0 %v4931_v9  ;;  %v1475_v9 = vrot.slane %v5837_v20, %v827_v33  ;;  %v5010_v33 = vld [vmem:[#allocation6 + $0x228] ss:$16 sps:$4 sm:$0xff]   ;;  %v5015_v20 = vld [vmem:[#allocation6 + $0x644] ss:$16 sps:$4 sm:$0xff]  }
 0x390   : > { %3231 = vmatpush1.bf16.msra.mxu1 %v4956_v42  ;;  %v5034_v42 = vld [vmem:[#allocation6 + $0x2a8] ss:$16 sps:$4 sm:$0xff]  }
 0x391   : > { %3232 = vmatprep.subr.bf16.mxu1 %v4964_v44  ;;  %v5870_v14 = vpack.c.bf16 %v1475_v9, %v1475_v9  ;;  %v5042_v44 = vld [vmem:[#allocation6 + $0x2cc] ss:$16 sps:$4 sm:$0xff]   ;;  %v5082_v9 = vld [vmem:[#allocation6 + $0x3a8] ss:$16 sps:$4 sm:$0xff]  }
 0x392   : > { %3141 = vmatpush1.bf16.msra.mxu0 %v4929_v11  ;;  %v5868_v11 = vpack.c.bf16 %v1463_v5, %v1463_v5  ;;  %v5076_v5 = vld [vmem:[#allocation6 + $0x388] ss:$16 sps:$4 sm:$0xff]  }
 0x393   : > { %3142 = vmatprep.subr.bf16.mxu0 %v4937_v13  ;;  %v5012_v13 = vld [vmem:[#allocation6 + $0x22c] ss:$16 sps:$4 sm:$0xff]  }
 0x394   : > { %3233 = vmatpush1.bf16.msra.mxu1 %v4962_v46  ;;  %v5040_v46 = vld [vmem:[#allocation6 + $0x2c8] ss:$16 sps:$4 sm:$0xff]  }
 0x395   : > { %3234 = vmatprep.subr.bf16.mxu1 %v4970_v23  ;;  %v5048_v23 = vld [vmem:[#allocation6 + $0x2ec] ss:$16 sps:$4 sm:$0xff]  }
 0x396   : > { %3143 = vmatpush1.bf16.msra.mxu0 %v4935_v15  ;;  %v5007_v15 = vld [vmem:[#allocation6 + $0x620] ss:$16 sps:$4 sm:$0xff]  }
 0x397   : > { %3144 = vmatprep.subr.bf16.mxu0 %v4943_v17  ;;  %v5013_v17 = vld [vmem:[#allocation6 + $0x640] ss:$16 sps:$4 sm:$0xff]  }
 0x398   : > { %3235 = vmatpush1.bf16.msra.mxu1 %v4968_v48  ;;  %v5046_v48 = vld [vmem:[#allocation6 + $0x2e8] ss:$16 sps:$4 sm:$0xff]  }
 0x399   : > { %3236 = vmatprep.subr.bf16.mxu1 %v4976_v50  ;;  %v5054_v50 = vld [vmem:[#allocation6 + $0x30c] ss:$16 sps:$4 sm:$0xff]  }
 0x39a   : > { %3145 = vmatpush1.bf16.msra.mxu0 %v4941_v19  ;;  %v5021_v19 = vld [vmem:[#allocation6 + $0x664] ss:$16 sps:$4 sm:$0xff]  }
 0x39b   : > { %3146 = vmatprep.subr.bf16.mxu0 %v4949_v22  ;;  %v5022_v22 = vld [vmem:[#allocation6 + $0x268] ss:$16 sps:$4 sm:$0xff]  }
 0x39c   : > { %3237 = vmatpush1.bf16.msra.mxu1 %v4974_v52  ;;  %v5052_v52 = vld [vmem:[#allocation6 + $0x308] ss:$16 sps:$4 sm:$0xff]  }
 0x39d   : > { %3238 = vmatprep.subr.bf16.mxu1 %v4982_v54  ;;  %v5060_v54 = vld [vmem:[#allocation6 + $0x32c] ss:$16 sps:$4 sm:$0xff]  }
 0x39e   : > { %3147 = vmatpush1.bf16.msra.mxu0 %v4947_v25  ;;  %v5030_v25 = vld [vmem:[#allocation6 + $0x28c] ss:$16 sps:$4 sm:$0xff]  }
 0x39f   : > { %3148 = vmatprep.subr.bf16.mxu0 %v4955_v27  ;;  %v5033_v27 = vld [vmem:[#allocation6 + $0x6a4] ss:$16 sps:$4 sm:$0xff]  }
 0x3a0   : > { %3239 = vmatpush1.bf16.msra.mxu1 %v4980_v56  ;;  %v5058_v56 = vld [vmem:[#allocation6 + $0x328] ss:$16 sps:$4 sm:$0xff]  }
 0x3a1   : > { %3240 = vmatprep.subr.bf16.mxu1 %v4988_v59  ;;  %v5066_v59 = vld [vmem:[#allocation6 + $0x34c] ss:$16 sps:$4 sm:$0xff]  }
 0x3a2   : > { %3149 = vmatpush1.bf16.msra.mxu0 %v4953_v41  ;;  %v5031_v41 = vld [vmem:[#allocation6 + $0x6a0] ss:$16 sps:$4 sm:$0xff]  }
 0x3a3   : > { %3150 = vmatprep.subr.bf16.mxu0 %v4961_v43  ;;  %v5039_v43 = vld [vmem:[#allocation6 + $0x6c4] ss:$16 sps:$4 sm:$0xff]  }
 0x3a4   : > { %3241 = vmatpush1.bf16.msra.mxu1 %v4986_v62  ;;  %v5064_v62 = vld [vmem:[#allocation6 + $0x348] ss:$16 sps:$4 sm:$0xff]  }
 0x3a5   : > { %3242 = vmatprep.subr.bf16.mxu1 %v4994_v0  ;;  %v5072_v0 = vld [vmem:[#allocation6 + $0x36c] ss:$16 sps:$4 sm:$0xff]  }
 0x3a6   : > { %3151 = vmatpush1.bf16.msra.mxu0 %v4959_v45  ;;  %v5037_v45 = vld [vmem:[#allocation6 + $0x6c0] ss:$16 sps:$4 sm:$0xff]  }
 0x3a7   : > { %3152 = vmatprep.subr.bf16.mxu0 %v4967_v47  ;;  %v5045_v47 = vld [vmem:[#allocation6 + $0x6e4] ss:$16 sps:$4 sm:$0xff]  }
 0x3a8   : > { %3243 = vmatpush1.bf16.msra.mxu1 %v4992_v1  ;;  %v5070_v1 = vld [vmem:[#allocation6 + $0x368] ss:$16 sps:$4 sm:$0xff]  }
 0x3a9   : > { %3244 = vmatprep.subr.bf16.mxu1 %v5000_v3  ;;  %v5078_v3 = vld [vmem:[#allocation6 + $0x38c] ss:$16 sps:$4 sm:$0xff]  }
 0x3aa   : > { %3153 = vmatpush1.bf16.msra.mxu0 %v4965_v29  ;;  %v5043_v29 = vld [vmem:[#allocation6 + $0x6e0] ss:$16 sps:$4 sm:$0xff]  }
 0x3ab   : > { %3154 = vmatprep.subr.bf16.mxu0 %v4973_v49  ;;  %v5051_v49 = vld [vmem:[#allocation6 + $0x704] ss:$16 sps:$4 sm:$0xff]  }
 0x3ac   : > { %3245 = vmatpush1.bf16.msra.mxu1 %v4998_v6  ;;  %v5081_v6 = vld [vmem:[#allocation6 + $0x7a4] ss:$16 sps:$4 sm:$0xff]  }
 0x3ad   : > { %3255 = vmatprep.subr.bf16.mxu1 %v5006_v8  ;;  %v5079_v8 = vld [vmem:[#allocation6 + $0x7a0] ss:$16 sps:$4 sm:$0xff]  }
 0x3ae   : > { %3155 = vmatpush1.bf16.msra.mxu0 %v4971_v51  ;;  %v5049_v51 = vld [vmem:[#allocation6 + $0x700] ss:$16 sps:$4 sm:$0xff]  }
 0x3af   : > { %3156 = vmatprep.subr.bf16.mxu0 %v4979_v53  ;;  %3247 = vmatmul.mubr.bf16.vlgmr.msra.gmra.mrb[4].mxu1 %v5853_v58  ;;  %v5024_v58 = vld [vmem:[#allocation6 + $0x26c] ss:$16 sps:$4 sm:$0xff]   ;;  %v5057_v53 = vld [vmem:[#allocation6 + $0x724] ss:$16 sps:$4 sm:$0xff]  }
 0x3b0   : > { %3256 = vmatpush1.bf16.msra.mxu1 %v5004_v12  ;;  %3287 = vmatprep.mubr.bf16.mxu1 %v5843_v34  ;;  %v5028_v34 = vld [vmem:[#allocation6 + $0x288] ss:$16 sps:$4 sm:$0xff]   ;;  %v5090_v12 = vld [vmem:[#allocation6 + $0x3cc] ss:$16 sps:$4 sm:$0xff]  }
 0x3b1   : > { %3257 = vmatprep.subr.bf16.mxu1 %v5012_v13  ;;  %v5088_v13 = vld [vmem:[#allocation6 + $0x3c8] ss:$16 sps:$4 sm:$0xff]  }
 0x3b2   : > { %3157 = vmatpush1.bf16.msra.mxu0 %v4977_v55  ;;  %v5055_v55 = vld [vmem:[#allocation6 + $0x720] ss:$16 sps:$4 sm:$0xff]  }
 0x3b3   : > { %3158 = vmatprep.subr.bf16.mxu0 %v4985_v57  ;;  %v5063_v57 = vld [vmem:[#allocation6 + $0x744] ss:$16 sps:$4 sm:$0xff]  }
 0x3b4   : > { %3258 = vmatpush1.bf16.msra.mxu1 %v5010_v33  ;;  %v5096_v33 = vld [vmem:[#allocation6 + $0x3ec] ss:$16 sps:$4 sm:$0xff]  }
 0x3b5   : > { %3259 = vmatprep.subr.bf16.mxu1 %v5018_v16  ;;  %v5305_v16 = vld [vmem:[#allocation2] sm:$0xff] }
 0x3b6   : > { %3159 = vmatpush1.bf16.msra.mxu0 %v4983_v61  ;;  %v5061_v61 = vld [vmem:[#allocation6 + $0x740] ss:$16 sps:$4 sm:$0xff]  }
 0x3b7   : > { %3160 = vmatprep.subr.bf16.mxu0 %v4991_v38  ;;  %v5069_v38 = vld [vmem:[#allocation6 + $0x764] ss:$16 sps:$4 sm:$0xff]  }
 0x3b8   : > { %3260 = vmatpush1.bf16.msra.mxu1 %v5016_v18  ;;  %v5094_v18 = vld [vmem:[#allocation6 + $0x3e8] ss:$16 sps:$4 sm:$0xff]  }
 0x3b9   : > { %3261 = vmatprep.subr.bf16.mxu1 %v5024_v58  ;;  %v5097_v58 = vld [vmem:[#allocation6 + $0x408] ss:$16 sps:$4 sm:$0xff]  }
 0x3ba   : > { %3161 = vmatpush1.bf16.msra.mxu0 %v4989_v32  ;;  %v5067_v32 = vld [vmem:[#allocation6 + $0x760] ss:$16 sps:$4 sm:$0xff]  }
 0x3bb   : > { %3162 = vmatprep.subr.bf16.mxu0 %v4997_v2  ;;  %v5075_v2 = vld [vmem:[#allocation6 + $0x784] ss:$16 sps:$4 sm:$0xff]  }
 0x3bc   : > { %3262 = vmatpush1.bf16.msra.mxu1 %v5022_v22  ;;  %v5102_v22 = vld [vmem:[#allocation6 + $0x42c] ss:$16 sps:$4 sm:$0xff]  }
 0x3bd   : > { %3263 = vmatprep.subr.bf16.mxu1 %v5030_v25  ;;  %v5198_v25 = vld [vmem:[#allocation8 + $0x14] ss:$8 sps:$4 sm:$0xff]  }
 0x3be   : > { %3163 = vmatpush1.bf16.msra.mxu0 %v4995_v4  ;;  %v5073_v4 = vld [vmem:[#allocation6 + $0x780] ss:$16 sps:$4 sm:$0xff]  }
 0x3bf   : > { %3173 = vmatprep.subr.bf16.mxu0 %v5003_v7  ;;  %v5084_v7 = vld [vmem:[#allocation6 + $0x3ac] ss:$16 sps:$4 sm:$0xff]  }
 0x3c0   : > { %3264 = vmatpush1.bf16.msra.mxu1 %v5028_v34  ;;  %v5196_v34 = vld [vmem:[#allocation8 + $0x10] ss:$8 sps:$4 sm:$0xff]  }
 0x3c1   : > { %3165 = vmatmul.mubr.bf16.vlgmr.msra.gmra.mrb[0].mxu0 %v5868_v11  ;;  %3265 = vmatprep.subr.bf16.mxu1 %v5036_v28  ;;  %v5103_v28 = vld [vmem:[#allocation6 + $0x448] ss:$16 sps:$4 sm:$0xff]  }
 0x3c2   : > { %3174 = vmatpush1.bf16.msra.mxu0 %v5001_v10  ;;  %3205 = vmatprep.mubr.bf16.mxu0 %v5870_v14  ;;  %v5087_v10 = vld [vmem:[#allocation6 + $0x7c4] ss:$16 sps:$4 sm:$0xff]  }
 0x3c3   : > { %3175 = vmatprep.subr.bf16.mxu0 %v5009_v30  ;;  %v5085_v30 = vld [vmem:[#allocation6 + $0x7c0] ss:$16 sps:$4 sm:$0xff]  }
 0x3c4   : > { %3266 = vmatpush1.bf16.msra.mxu1 %v5034_v42  ;;  %v5106_v42 = vld [vmem:[#allocation6 + $0x468] ss:$16 sps:$4 sm:$0xff]  }
 0x3c5   : > { %3267 = vmatprep.subr.bf16.mxu1 %v5042_v44  ;;  %v5204_v44 = vld [vmem:[#allocation8 + $0x34] ss:$8 sps:$4 sm:$0xff]  }
 0x3c6   : > { %3176 = vmatpush1.bf16.msra.mxu0 %v5007_v15  ;;  %v5093_v15 = vld [vmem:[#allocation6 + $0x7e4] ss:$16 sps:$4 sm:$0xff]  }
 0x3c7   : > { %3177 = vmatprep.subr.bf16.mxu0 %v5015_v20  ;;  %v5091_v20 = vld [vmem:[#allocation6 + $0x7e0] ss:$16 sps:$4 sm:$0xff]  }
 0x3c8   : > { %3268 = vmatpush1.bf16.msra.mxu1 %v5040_v46  ;;  %v5109_v46 = vld [vmem:[#allocation6 + $0x488] ss:$16 sps:$4 sm:$0xff]  }
 0x3c9   : > { %3269 = vmatprep.subr.bf16.mxu1 %v5048_v23  ;;  %v5205_v23 = vld [vmem:[#allocation8 + $0x40] ss:$8 sps:$4 sm:$0xff]  }
 0x3ca   : > { %3178 = vmatpush1.bf16.msra.mxu0 %v5013_v17  ;;  %v1471_v17 = vrot.slane %v5305_v16, %v823_v31  ;;  %v5100_v31 = vld [vmem:[#allocation6 + $0x428] ss:$16 sps:$4 sm:$0xff]  }
 0x3cb   : > { %3179 = vmatprep.subr.bf16.mxu0 %v5021_v19  ;;  %v5099_v19 = vld [vmem:[#allocation6 + $0x40c] ss:$16 sps:$4 sm:$0xff]   ;;  %v5136_v16 = vld [vmem:[#allocation6 + $0x5a8] ss:$16 sps:$4 sm:$0xff]  }
 0x3cc   : > { %3270 = vmatpush1.bf16.msra.mxu1 %v5046_v48  ;;  %v5112_v48 = vld [vmem:[#allocation6 + $0x4a8] ss:$16 sps:$4 sm:$0xff]  }
 0x3cd   : > { %3271 = vmatprep.subr.bf16.mxu1 %v5054_v50  ;;  %v5208_v50 = vld [vmem:[#allocation8 + $0x50] ss:$8 sps:$4 sm:$0xff]  }
 0x3ce   : > { %3180 = vmatpush1.bf16.msra.mxu0 %v5019_v21  ;;  %v5878_v21 = vpack.c.bf16 %v1471_v17, %v1471_v17  ;;  %v5141_v17 = vld [vmem:[#allocation6 + $0x5cc] ss:$16 sps:$4 sm:$0xff]  }
 0x3cf   : > { %3181 = vmatprep.subr.bf16.mxu0 %v5027_v24  ;;  %v5193_v24 = vld [vmem:[#allocation8] ss:$8 sps:$4 sm:$0xff]  }
 0x3d0   : > { %3272 = vmatpush1.bf16.msra.mxu1 %v5052_v52  ;;  %v5115_v52 = vld [vmem:[#allocation6 + $0x4c8] ss:$16 sps:$4 sm:$0xff]  }
 0x3d1   : > { %3273 = vmatprep.subr.bf16.mxu1 %v5060_v54  ;;  %v5211_v54 = vld [vmem:[#allocation8 + $0x60] ss:$8 sps:$4 sm:$0xff]  }
 0x3d2   : > { %3182 = vmatpush1.bf16.msra.mxu0 %v5025_v26  ;;  %v5105_v26 = vld [vmem:[#allocation6 + $0x44c] ss:$16 sps:$4 sm:$0xff]  }
 0x3d3   : > { %3183 = vmatprep.subr.bf16.mxu0 %v5033_v27  ;;  %v5201_v27 = vld [vmem:[#allocation8 + $0x24] ss:$8 sps:$4 sm:$0xff]  }
 0x3d4   : > { %3274 = vmatpush1.bf16.msra.mxu1 %v5058_v56  ;;  %v5118_v56 = vld [vmem:[#allocation6 + $0x4e8] ss:$16 sps:$4 sm:$0xff]  }
 0x3d5   : > { %3275 = vmatprep.subr.bf16.mxu1 %v5066_v59  ;;  %v5214_v59 = vld [vmem:[#allocation8 + $0x70] ss:$8 sps:$4 sm:$0xff]  }
 0x3d6   : > { %3184 = vmatpush1.bf16.msra.mxu0 %v5031_v41  ;;  %v5108_v41 = vld [vmem:[#allocation6 + $0x46c] ss:$16 sps:$4 sm:$0xff]  }
 0x3d7   : > { %3185 = vmatprep.subr.bf16.mxu0 %v5039_v43  ;;  %v5111_v43 = vld [vmem:[#allocation6 + $0x48c] ss:$16 sps:$4 sm:$0xff]  }
 0x3d8   : > { %3276 = vmatpush1.bf16.msra.mxu1 %v5064_v62  ;;  %v5121_v62 = vld [vmem:[#allocation6 + $0x508] ss:$16 sps:$4 sm:$0xff]  }
 0x3d9   : > { %3277 = vmatprep.subr.bf16.mxu1 %v5072_v0  ;;  %v5217_v0 = vld [vmem:[#allocation8 + $0x80] ss:$8 sps:$4 sm:$0xff]  }
 0x3da   : > { %3186 = vmatpush1.bf16.msra.mxu0 %v5037_v45  ;;  %v5207_v45 = vld [vmem:[#allocation8 + $0x44] ss:$8 sps:$4 sm:$0xff]  }
 0x3db   : > { %3187 = vmatprep.subr.bf16.mxu0 %v5045_v47  ;;  %v5114_v47 = vld [vmem:[#allocation6 + $0x4ac] ss:$16 sps:$4 sm:$0xff]  }
 0x3dc   : > { %3278 = vmatpush1.bf16.msra.mxu1 %v5070_v1  ;;  %v5124_v1 = vld [vmem:[#allocation6 + $0x528] ss:$16 sps:$4 sm:$0xff]  }
 0x3dd   : > { %3279 = vmatprep.subr.bf16.mxu1 %v5078_v3  ;;  %v5220_v3 = vld [vmem:[#allocation8 + $0x90] ss:$8 sps:$4 sm:$0xff]  }
 0x3de   : > { %3188 = vmatpush1.bf16.msra.mxu0 %v5043_v29  ;;  %v5210_v29 = vld [vmem:[#allocation8 + $0x54] ss:$8 sps:$4 sm:$0xff]  }
 0x3df   : > { %3189 = vmatprep.subr.bf16.mxu0 %v5051_v49  ;;  %v5117_v49 = vld [vmem:[#allocation6 + $0x4cc] ss:$16 sps:$4 sm:$0xff]  }
 0x3e0   : > { %3280 = vmatpush1.bf16.msra.mxu1 %v5076_v5  ;;  %v5127_v5 = vld [vmem:[#allocation6 + $0x548] ss:$16 sps:$4 sm:$0xff]  }
 0x3e1   : > { %3281 = vmatprep.subr.bf16.mxu1 %v5084_v7  ;;  %v5223_v7 = vld [vmem:[#allocation8 + $0xa0] ss:$8 sps:$4 sm:$0xff]  }
 0x3e2   : > { %3190 = vmatpush1.bf16.msra.mxu0 %v5049_v51  ;;  %v5213_v51 = vld [vmem:[#allocation8 + $0x64] ss:$8 sps:$4 sm:$0xff]  }
 0x3e3   : > { %3191 = vmatprep.subr.bf16.mxu0 %v5057_v53  ;;  %v5120_v53 = vld [vmem:[#allocation6 + $0x4ec] ss:$16 sps:$4 sm:$0xff]  }
 0x3e4   : > { %3282 = vmatpush1.bf16.msra.mxu1 %v5082_v9  ;;  %v5130_v9 = vld [vmem:[#allocation6 + $0x568] ss:$16 sps:$4 sm:$0xff]  }
 0x3e5   : > { %3283 = vmatprep.subr.bf16.mxu1 %v5090_v12  ;;  %v5226_v12 = vld [vmem:[#allocation8 + $0xb0] ss:$8 sps:$4 sm:$0xff]  }
 0x3e6   : > { %3192 = vmatpush1.bf16.msra.mxu0 %v5055_v55  ;;  %v5216_v55 = vld [vmem:[#allocation8 + $0x74] ss:$8 sps:$4 sm:$0xff]  }
 0x3e7   : > { %3193 = vmatprep.subr.bf16.mxu0 %v5063_v57  ;;  %v5123_v57 = vld [vmem:[#allocation6 + $0x50c] ss:$16 sps:$4 sm:$0xff]  }
 0x3e8   : > { %3284 = vmatpush1.bf16.msra.mxu1 %v5088_v13  ;;  %v5133_v13 = vld [vmem:[#allocation6 + $0x588] ss:$16 sps:$4 sm:$0xff]  }
 0x3e9   : > { %3285 = vmatprep.subr.bf16.mxu1 %v5096_v33  ;;  %v5229_v33 = vld [vmem:[#allocation8 + $0xc0] ss:$8 sps:$4 sm:$0xff]  }
 0x3ea   : > { %3194 = vmatpush1.bf16.msra.mxu0 %v5061_v61  ;;  %v5219_v61 = vld [vmem:[#allocation8 + $0x84] ss:$8 sps:$4 sm:$0xff]  }
 0x3eb   : > { %3195 = vmatprep.subr.bf16.mxu0 %v5069_v38  ;;  %v5126_v38 = vld [vmem:[#allocation6 + $0x52c] ss:$16 sps:$4 sm:$0xff]  }
 0x3ec   : > { %3286 = vmatpush1.bf16.msra.mxu1 %v5094_v18  ;;  %v5232_v18 = vld [vmem:[#allocation8 + $0xd0] ss:$8 sps:$4 sm:$0xff]  }
 0x3ed   : > { %3296 = vmatprep.subr.bf16.mxu1 %v5099_v19  ;;  %v5139_v19 = vld [vmem:[#allocation6 + $0x5c8] ss:$16 sps:$4 sm:$0xff]  }
 0x3ee   : > { %3196 = vmatpush1.bf16.msra.mxu0 %v5067_v32  ;;  %v5222_v32 = vld [vmem:[#allocation8 + $0x94] ss:$8 sps:$4 sm:$0xff]  }
 0x3ef   : > { %3197 = vmatprep.subr.bf16.mxu0 %v5075_v2  ;;  %3288 = vmatmul.mubr.bf16.vlgmr.msra.gmra.mrb[4].mxu1 %v5855_v60  ;;  %v5199_v60 = vld [vmem:[#allocation8 + $0x20] ss:$8 sps:$4 sm:$0xff]   ;;  %v5129_v2 = vld [vmem:[#allocation6 + $0x54c] ss:$16 sps:$4 sm:$0xff]  }
 0x3f0   : > { %3297 = vmatpush1.bf16.msra.mxu1 %v5097_v58  ;;  %3328 = vmatprep.mubr.bf16.mxu1 %v5857_v63  ;;  %v5202_v63 = vld [vmem:[#allocation8 + $0x30] ss:$8 sps:$4 sm:$0xff]   ;;  %v5144_v58 = vld [vmem:[#allocation6 + $0x5ec] ss:$16 sps:$4 sm:$0xff]  }
 0x3f1   : > { %3298 = vmatprep.subr.bf16.mxu1 %v5102_v22  ;;  %v5142_v22 = vld [vmem:[#allocation6 + $0x5e8] ss:$16 sps:$4 sm:$0xff]  }
 0x3f2   : > { %3198 = vmatpush1.bf16.msra.mxu0 %v5073_v4  ;;  %v5225_v4 = vld [vmem:[#allocation8 + $0xa4] ss:$8 sps:$4 sm:$0xff]  }
 0x3f3   : > { %3199 = vmatprep.subr.bf16.mxu0 %v5081_v6  ;;  %v5132_v6 = vld [vmem:[#allocation6 + $0x56c] ss:$16 sps:$4 sm:$0xff]  }
 0x3f4   : > { %3299 = vmatpush1.bf16.msra.mxu1 %v5100_v31  ;;  %v5150_v31 = vld [vmem:[#allocation6 + $0x62c] ss:$16 sps:$4 sm:$0xff]  }
 0x3f5   : > { %3300 = vmatprep.subr.bf16.mxu1 %v5105_v26  ;;  %v5153_v26 = vld [vmem:[#allocation6 + $0x64c] ss:$16 sps:$4 sm:$0xff]  }
 0x3f6   : > { %3200 = vmatpush1.bf16.msra.mxu0 %v5079_v8  ;;  %v5228_v8 = vld [vmem:[#allocation8 + $0xb4] ss:$8 sps:$4 sm:$0xff]  }
 0x3f7   : > { %3201 = vmatprep.subr.bf16.mxu0 %v5087_v10  ;;  %v5135_v10 = vld [vmem:[#allocation6 + $0x58c] ss:$16 sps:$4 sm:$0xff]  }
 0x3f8   : > { %3301 = vmatpush1.bf16.msra.mxu1 %v5103_v28  ;;  %v5154_v28 = vld [vmem:[#allocation6 + $0x668] ss:$16 sps:$4 sm:$0xff]  }
 0x3f9   : > { %3302 = vmatprep.subr.bf16.mxu1 %v5108_v41  ;;  %v5159_v41 = vld [vmem:[#allocation6 + $0x68c] ss:$16 sps:$4 sm:$0xff]  }
 0x3fa   : > { %3202 = vmatpush1.bf16.msra.mxu0 %v5085_v30  ;;  %v5231_v30 = vld [vmem:[#allocation8 + $0xc4] ss:$8 sps:$4 sm:$0xff]  }
 0x3fb   : > { %3203 = vmatprep.subr.bf16.mxu0 %v5093_v15  ;;  %v5138_v15 = vld [vmem:[#allocation6 + $0x5ac] ss:$16 sps:$4 sm:$0xff]  }
 0x3fc   : > { %3303 = vmatpush1.bf16.msra.mxu1 %v5106_v42  ;;  %v5162_v42 = vld [vmem:[#allocation6 + $0x6ac] ss:$16 sps:$4 sm:$0xff]  }
 0x3fd   : > { %3304 = vmatprep.subr.bf16.mxu1 %v5111_v43  ;;  %v5165_v43 = vld [vmem:[#allocation6 + $0x6cc] ss:$16 sps:$4 sm:$0xff]  }
 0x3fe   : > { %3204 = vmatpush1.bf16.msra.mxu0 %v5091_v20  ;;  %v5234_v20 = vld [vmem:[#allocation8 + $0xd4] ss:$8 sps:$4 sm:$0xff]  }
 0x3ff   : > { %3782 = vmatprep.subr.bf16.mxu0 %v5195_v35  ;;  %v5145_v35 = vld [vmem:[#allocation6 + $0x608] ss:$16 sps:$4 sm:$0xff]  }
 0x400   : > { %3305 = vmatpush1.bf16.msra.mxu1 %v5109_v46 }
 0x401   : > { %3206 = vmatmul.mubr.bf16.vlgmr.msra.gmra.mrb[0].mxu0 %v5878_v21  ;;  %3306 = vmatprep.subr.bf16.mxu1 %v5114_v47  ;;  %v5163_v47 = vld [vmem:[#allocation6 + $0x6c8] ss:$16 sps:$4 sm:$0xff]  }
 0x402   : > { %3783 = vmatpush1.bf16.msra.mxu0 %v5193_v24  ;;  %v5147_v24 = vld [vmem:[#allocation6 + $0x60c] ss:$16 sps:$4 sm:$0xff]  }
 0x403   : > { %3784 = vmatprep.subr.bf16.mxu0 %v5198_v25  ;;  %v5148_v25 = vld [vmem:[#allocation6 + $0x628] ss:$16 sps:$4 sm:$0xff]  }
 0x404   : > { %3307 = vmatpush1.bf16.msra.mxu1 %v5112_v48  ;;  %v5240_v48 = vld [vmem:[#allocation8 + $0xf4] ss:$8 sps:$4 sm:$0xff]  }
 0x405   : > { %3308 = vmatprep.subr.bf16.mxu1 %v5117_v49  ;;  %v5238_v49 = vld [vmem:[#allocation8 + $0xf0] ss:$8 sps:$4 sm:$0xff]  }
 0x406   : > { %3785 = vmatpush1.bf16.msra.mxu0 %v5196_v34  ;;  %v5151_v34 = vld [vmem:[#allocation6 + $0x648] ss:$16 sps:$4 sm:$0xff]  }
 0x407   : > { %3786 = vmatprep.subr.bf16.mxu0 %v5201_v27  ;;  %v5156_v27 = vld [vmem:[#allocation6 + $0x66c] ss:$16 sps:$4 sm:$0xff]  }
 0x408   : > { %3309 = vmatpush1.bf16.msra.mxu1 %v5115_v52  ;;  %v5243_v52 = vld [vmem:[#allocation8 + $0x104] ss:$8 sps:$4 sm:$0xff]  }
 0x409   : > { %3310 = vmatprep.subr.bf16.mxu1 %v5120_v53  ;;  %v5169_v53 = vld [vmem:[#allocation6 + $0x708] ss:$16 sps:$4 sm:$0xff]  }
 0x40a   : > { %3787 = vmatpush1.bf16.msra.mxu0 %v5199_v60  ;;  %v5157_v60 = vld [vmem:[#allocation6 + $0x688] ss:$16 sps:$4 sm:$0xff]  }
 0x40b   : > { %3788 = vmatprep.subr.bf16.mxu0 %v5204_v44  ;;  %v5237_v44 = vld [vmem:[#allocation8 + $0xe4] ss:$8 sps:$4 sm:$0xff]  }
 0x40c   : > { %3311 = vmatpush1.bf16.msra.mxu1 %v5118_v56  ;;  %v5177_v56 = vld [vmem:[#allocation6 + $0x74c] ss:$16 sps:$4 sm:$0xff]  }
 0x40d   : > { %3312 = vmatprep.subr.bf16.mxu1 %v5123_v57  ;;  %v5175_v57 = vld [vmem:[#allocation6 + $0x748] ss:$16 sps:$4 sm:$0xff]  }
 0x40e   : > { %3789 = vmatpush1.bf16.msra.mxu0 %v5202_v63  ;;  %v5235_v63 = vld [vmem:[#allocation8 + $0xe0] ss:$8 sps:$4 sm:$0xff]  }
 0x40f   : > { %3790 = vmatprep.subr.bf16.mxu0 %v5207_v45 }
 0x410   : > { %3313 = vmatpush1.bf16.msra.mxu1 %v5121_v62  ;;  %v5183_v62 = vld [vmem:[#allocation6 + $0x78c] ss:$16 sps:$4 sm:$0xff]  }
 0x411   : > { %3314 = vmatprep.subr.bf16.mxu1 %v5126_v38  ;;  %v5181_v38 = vld [vmem:[#allocation6 + $0x788] ss:$16 sps:$4 sm:$0xff]  }
 0x412   : > { %3791 = vmatpush1.bf16.msra.mxu0 %v5205_v23 }
 0x413   : > { %3792 = vmatprep.subr.bf16.mxu0 %v5210_v29  ;;  %v5168_v29 = vld [vmem:[#allocation6 + $0x6ec] ss:$16 sps:$4 sm:$0xff]  }
 0x414   : > { %3315 = vmatpush1.bf16.msra.mxu1 %v5124_v1  ;;  %v5189_v1 = vld [vmem:[#allocation6 + $0x7cc] ss:$16 sps:$4 sm:$0xff]  }
 0x415   : > { %3316 = vmatprep.subr.bf16.mxu1 %v5129_v2  ;;  %v5187_v2 = vld [vmem:[#allocation6 + $0x7c8] ss:$16 sps:$4 sm:$0xff]  }
 0x416   : > { %3793 = vmatpush1.bf16.msra.mxu0 %v5208_v50  ;;  %v5166_v50 = vld [vmem:[#allocation6 + $0x6e8] ss:$16 sps:$4 sm:$0xff]  }
 0x417   : > { %3794 = vmatprep.subr.bf16.mxu0 %v5213_v51  ;;  %v5171_v51 = vld [vmem:[#allocation6 + $0x70c] ss:$16 sps:$4 sm:$0xff]  }
 0x418   : > { %3317 = vmatpush1.bf16.msra.mxu1 %v5127_v5  ;;  %v5889_v5 = vld [vmem:[%s6019_s9] sm:$0xf] }
 0x419   : > { %3318 = vmatprep.subr.bf16.mxu1 %v5132_v6  ;;  %v3033_v6 = vrot.slane %v5889_v5, %v5795_v36 }
 0x41a   : > { %3795 = vmatpush1.bf16.msra.mxu0 %v5211_v54  ;;  %v5174_v54 = vld [vmem:[#allocation6 + $0x72c] ss:$16 sps:$4 sm:$0xff]  }
 0x41b   : > { %3796 = vmatprep.subr.bf16.mxu0 %v5216_v55  ;;  %v5172_v55 = vld [vmem:[#allocation6 + $0x728] ss:$16 sps:$4 sm:$0xff]  }
 0x41c   : > { %3319 = vmatpush1.bf16.msra.mxu1 %v5130_v9 }
 0x41d   : > { %3320 = vmatprep.subr.bf16.mxu1 %v5135_v10 }
 0x41e   : > { %3797 = vmatpush1.bf16.msra.mxu0 %v5214_v59  ;;  %v5180_v59 = vld [vmem:[#allocation6 + $0x76c] ss:$16 sps:$4 sm:$0xff]  }
 0x41f   : > { %3798 = vmatprep.subr.bf16.mxu0 %v5219_v61  ;;  %v5178_v61 = vld [vmem:[#allocation6 + $0x768] ss:$16 sps:$4 sm:$0xff]  }
 0x420   : > { %3321 = vmatpush1.bf16.msra.mxu1 %v5133_v13 }
 0x421   : > { %3322 = vmatprep.subr.bf16.mxu1 %v5138_v15 }
 0x422   : > { %3799 = vmatpush1.bf16.msra.mxu0 %v5217_v0  ;;  %v5186_v0 = vld [vmem:[#allocation6 + $0x7ac] ss:$16 sps:$4 sm:$0xff]  }
 0x423   : > { %3800 = vmatprep.subr.bf16.mxu0 %v5222_v32  ;;  %v5184_v32 = vld [vmem:[#allocation6 + $0x7a8] ss:$16 sps:$4 sm:$0xff]  }
 0x424   : > { %3323 = vmatpush1.bf16.msra.mxu1 %v5136_v16 }
 0x425   : > { %3324 = vmatprep.subr.bf16.mxu1 %v5141_v17  ;;  %v5241_v17 = vld [vmem:[#allocation8 + $0x100] ss:$8 sps:$4 sm:$0xff]  }
 0x426   : > { %3801 = vmatpush1.bf16.msra.mxu0 %v5220_v3  ;;  %v5192_v3 = vld [vmem:[#allocation6 + $0x7ec] ss:$16 sps:$4 sm:$0xff]  }
 0x427   : > { %3802 = vmatprep.subr.bf16.mxu0 %v5225_v4  ;;  %v5190_v4 = vld [vmem:[#allocation6 + $0x7e8] ss:$16 sps:$4 sm:$0xff]  }
 0x428   : > { %3325 = vmatpush1.bf16.msra.mxu1 %v5139_v19  ;;  %v5246_v19 = vld [vmem:[#allocation8 + $0x114] ss:$8 sps:$4 sm:$0xff]  }
 0x429   : > { %3326 = vmatprep.subr.bf16.mxu1 %v5144_v58  ;;  %v5289_v58 = vld [vmem:[%s6063_s24 + $0x40] sm:$0xff]  }
 0x42a   : > { %3803 = vmatpush1.bf16.msra.mxu0 %v5223_v7  ;;  %v3037_v7 = vrot.slane %v5889_v5, %v5806_v39 }
 0x42b   : > { %3804 = vmatprep.subr.bf16.mxu0 %v5228_v8 }
 0x42c   : > { %3327 = vmatpush1.bf16.msra.mxu1 %v5142_v22  ;;  %v5290_v22 = vld [vmem:[%s6063_s24] sm:$0xff]  }
 0x42d   : > { %3337 = vmatprep.subr.bf16.mxu1 %v5147_v24  ;;  %v5291_v24 = vld [vmem:[%s6063_s24 + $0x48] sm:$0xff]  }
 0x42e   : > { %3805 = vmatpush1.bf16.msra.mxu0 %v5226_v12 }
 0x42f   : > { %3806 = vmatprep.subr.bf16.mxu0 %v5231_v30  ;;  %3329 = vmatmul.mubr.bf16.vlgmr.msra.gmra.mrb[4].mxu1 %v5868_v11  ;;  %v5160_v11 = vld [vmem:[#allocation6 + $0x6a8] ss:$16 sps:$4 sm:$0xff]  }
 0x430   : > { %3338 = vmatpush1.bf16.msra.mxu1 %v5145_v35  ;;  %3369 = vmatprep.mubr.bf16.mxu1 %v5870_v14  ;;  %v5244_v35 = vld [vmem:[#allocation8 + $0x110] ss:$8 sps:$4 sm:$0xff]  }
 0x431   : > { %3339 = vmatprep.subr.bf16.mxu1 %v5150_v31  ;;  %v5249_v31 = vld [vmem:[#allocation8 + $0x124] ss:$8 sps:$4 sm:$0xff]  }
 0x432   : > { %3807 = vmatpush1.bf16.msra.mxu0 %v5229_v33 }
 0x433   : > { %3808 = vmatprep.subr.bf16.mxu0 %v5234_v20 }
 0x434   : > { %3340 = vmatpush1.bf16.msra.mxu1 %v5148_v25  ;;  %v5292_v25 = vld [vmem:[%s6063_s24 + $0x8] sm:$0xff]  }
 0x435   : > { %3341 = vmatprep.subr.bf16.mxu1 %v5153_v26  ;;  %v5293_v26 = vld [vmem:[%s6063_s24 + $0x50] sm:$0xff]  }
 0x436   : > { %3809 = vmatpush1.bf16.msra.mxu0 %v5232_v18 }
 0x437   : > { %3810 = vmatprep.subr.bf16.mxu0 %v5237_v44  ;;  %v5253_v44 = vld [vmem:[#allocation8 + $0x140] ss:$8 sps:$4 sm:$0xff]  }
 0x438   : > { %3342 = vmatpush1.bf16.msra.mxu1 %v5151_v34  ;;  %v5247_v34 = vld [vmem:[#allocation8 + $0x120] ss:$8 sps:$4 sm:$0xff]  }
 0x439   : > { %3343 = vmatprep.subr.bf16.mxu1 %v5156_v27  ;;  %v5252_v27 = vld [vmem:[#allocation8 + $0x134] ss:$8 sps:$4 sm:$0xff]  }
 0x43a   : > { %3811 = vmatpush1.bf16.msra.mxu0 %v5235_v63  ;;  %v5298_v63 = vld [vmem:[%s6063_s24 + $0x20] sm:$0xff]  }
 0x43b   : > { %3812 = vmatprep.subr.bf16.mxu0 %v5240_v48  ;;  %v5264_v48 = vld [vmem:[#allocation8 + $0x174] ss:$8 sps:$4 sm:$0xff]  }
 0x43c   : > { %3344 = vmatpush1.bf16.msra.mxu1 %v5154_v28  ;;  %v5294_v28 = vld [vmem:[%s6063_s24 + $0x10] sm:$0xff]  }
 0x43d   : > { %3345 = vmatprep.subr.bf16.mxu1 %v5159_v41  ;;  %v5295_v41 = vld [vmem:[%s6063_s24 + $0x58] sm:$0xff]  }
 0x43e   : > { %3813 = vmatpush1.bf16.msra.mxu0 %v5238_v49  ;;  %v5262_v49 = vld [vmem:[#allocation8 + $0x170] ss:$8 sps:$4 sm:$0xff]  }
 0x43f   : > { %3823 = vmatprep.subr.bf16.mxu0 %v5243_v52  ;;  %v5270_v52 = vld [vmem:[#allocation8 + $0x194] ss:$8 sps:$4 sm:$0xff]  }
 0x440   : > { %3346 = vmatpush1.bf16.msra.mxu1 %v5157_v60  ;;  %v5250_v60 = vld [vmem:[#allocation8 + $0x130] ss:$8 sps:$4 sm:$0xff]  }
 0x441   : > { %3347 = vmatprep.subr.bf16.mxu1 %v5162_v42  ;;  %v5255_v42 = vld [vmem:[#allocation8 + $0x144] ss:$8 sps:$4 sm:$0xff]  }
 0x442   : > { %v3084_v14 = vpop.f32.mrb[0].mxu1 }
 0x443   : > { %v3086_v45 = vpop.f32.mrb[1].mxu1  ;;  %v3085_v8 = vadd.f32 %v3084_v14, %v3033_v6  ;;  %v5258_v14 = vld [vmem:[#allocation8 + $0x154] ss:$8 sps:$4 sm:$0xff]  }
 0x444   : > { %v3088_v46 = vpop.f32.mrb[2].mxu1  ;;  %3348 = vmatpush1.bf16.msra.mxu1 %v5160_v11  ;;  %v3087_v9 = vadd.f32 %v3086_v45, %v3037_v7  ;;  %v5296_v11 = vld [vmem:[%s6063_s24 + $0x18] sm:$0xff]   ;;  %v5299_v45 = vld [vmem:[%s6063_s24 + $0x68] sm:$0xff]  }
 0x445   : > { %v3089_v23 = vpop.f32.mrb[3].mxu1  ;;  %3349 = vmatprep.subr.bf16.mxu1 %v5165_v43  ;;  %v5297_v43 = vld [vmem:[%s6063_s24 + $0x60] sm:$0xff]  }
 0x446   : > { %v5256_v46 = vld [vmem:[#allocation8 + $0x150] ss:$8 sps:$4 sm:$0xff]   ;;  %v5300_v23 = vld [vmem:[%s6063_s24 + $0x28] sm:$0xff]  }
 0x448   : > { %3350 = vmatpush1.bf16.msra.mxu1 %v5163_v47  ;;  %v5261_v47 = vld [vmem:[#allocation8 + $0x164] ss:$8 sps:$4 sm:$0xff]  }
 0x449   : > { %3351 = vmatprep.subr.bf16.mxu1 %v5168_v29  ;;  %v5259_v29 = vld [vmem:[#allocation8 + $0x160] ss:$8 sps:$4 sm:$0xff]  }
 0x44c   : > { %3352 = vmatpush1.bf16.msra.mxu1 %v5166_v50  ;;  %v5267_v50 = vld [vmem:[#allocation8 + $0x184] ss:$8 sps:$4 sm:$0xff]  }
 0x44d   : > { %3353 = vmatprep.subr.bf16.mxu1 %v5171_v51  ;;  %v5265_v51 = vld [vmem:[#allocation8 + $0x180] ss:$8 sps:$4 sm:$0xff]  }
 0x450   : > { %3354 = vmatpush1.bf16.msra.mxu1 %v5169_v53  ;;  %v5268_v53 = vld [vmem:[#allocation8 + $0x190] ss:$8 sps:$4 sm:$0xff]  }
 0x451   : > { %3355 = vmatprep.subr.bf16.mxu1 %v5174_v54  ;;  %v5273_v54 = vld [vmem:[#allocation8 + $0x1a4] ss:$8 sps:$4 sm:$0xff]  }
 0x454   : > { %3356 = vmatpush1.bf16.msra.mxu1 %v5172_v55  ;;  %v5271_v55 = vld [vmem:[#allocation8 + $0x1a0] ss:$8 sps:$4 sm:$0xff]  }
 0x455   : > { %3357 = vmatprep.subr.bf16.mxu1 %v5177_v56  ;;  %v5276_v56 = vld [vmem:[#allocation8 + $0x1b4] ss:$8 sps:$4 sm:$0xff]  }
 0x458   : > { %3358 = vmatpush1.bf16.msra.mxu1 %v5175_v57  ;;  %v5274_v57 = vld [vmem:[#allocation8 + $0x1b0] ss:$8 sps:$4 sm:$0xff]  }
 0x459   : > { %3359 = vmatprep.subr.bf16.mxu1 %v5180_v59  ;;  %v5279_v59 = vld [vmem:[#allocation8 + $0x1c4] ss:$8 sps:$4 sm:$0xff]  }
 0x45c   : > { %3360 = vmatpush1.bf16.msra.mxu1 %v5178_v61  ;;  %v5277_v61 = vld [vmem:[#allocation8 + $0x1c0] ss:$8 sps:$4 sm:$0xff]  }
 0x45d   : > { %3361 = vmatprep.subr.bf16.mxu1 %v5183_v62  ;;  %v5282_v62 = vld [vmem:[#allocation8 + $0x1d4] ss:$8 sps:$4 sm:$0xff]  }
 0x460   : > { %3362 = vmatpush1.bf16.msra.mxu1 %v5181_v38  ;;  %v5280_v38 = vld [vmem:[#allocation8 + $0x1d0] ss:$8 sps:$4 sm:$0xff]  }
 0x461   : > { %3363 = vmatprep.subr.bf16.mxu1 %v5186_v0  ;;  %v5285_v0 = vld [vmem:[#allocation8 + $0x1e4] ss:$8 sps:$4 sm:$0xff]  }
 0x464   : > { %3364 = vmatpush1.bf16.msra.mxu1 %v5184_v32  ;;  %v5283_v32 = vld [vmem:[#allocation8 + $0x1e0] ss:$8 sps:$4 sm:$0xff]  }
 0x465   : > { %3365 = vmatprep.subr.bf16.mxu1 %v5189_v1  ;;  %v5288_v1 = vld [vmem:[#allocation8 + $0x1f4] ss:$8 sps:$4 sm:$0xff]  }
 0x468   : > { %3366 = vmatpush1.bf16.msra.mxu1 %v5187_v2  ;;  %v5286_v2 = vld [vmem:[#allocation8 + $0x1f0] ss:$8 sps:$4 sm:$0xff]  }
 0x469   : > { %3367 = vmatprep.subr.bf16.mxu1 %v5192_v3  ;;  %v3041_v3 = vrot.slane %v5889_v5, %v5798_v37  ;;  %v5302_v37 = vld [vmem:[%s6063_s24 + $0x30] sm:$0xff]  }
 0x46c   : > { %3368 = vmatpush1.bf16.msra.mxu1 %v5190_v4  ;;  %v3045_v4 = vrot.slane %v5889_v5, %v5809_v40  ;;  %v5303_v40 = vld [vmem:[%s6063_s24 + $0x78] sm:$0xff]  }
 0x46d   : > { %4607 = vmatprep.subr.bf16.mxu1 %v5289_v58  ;;  %v5304_v5 = vld [vmem:[%s6063_s24 + $0x38] sm:$0xff]  }
 0x46f   : > { %3370 = vmatmul.mubr.bf16.vlgmr.msra.gmra.mrb[4].mxu1 %v5878_v21 }
 0x470   : > { %4608 = vmatpush3.bf16.msra.mxu1 %v5290_v22 }
 0x471   : > { %4609 = vmatprep.subr.bf16.mxu1 %v5291_v24 }
 0x474   : > { %4610 = vmatpush3.bf16.msra.mxu1 %v5292_v25 }
 0x475   : > { %4611 = vmatprep.subr.bf16.mxu1 %v5293_v26 }
 0x478   : > { %4612 = vmatpush3.bf16.msra.mxu1 %v5294_v28 }
 0x479   : > { %4613 = vmatprep.subr.bf16.mxu1 %v5295_v41 }
 0x47c   : > { %4614 = vmatpush3.bf16.msra.mxu1 %v5296_v11 }
 0x47d   : > { %4615 = vmatprep.subr.bf16.mxu1 %v5297_v43 }
 0x480   : > { %4616 = vmatpush3.bf16.msra.mxu1 %v5298_v63 }
 0x481   : > { %4617 = vmatprep.subr.bf16.mxu1 %v5299_v45 }
 0x484   : > { %4618 = vmatpush3.bf16.msra.mxu1 %v5300_v23 }
 0x4d4   : > { %v3207_v10 = vpop.f32.mrb[0].mxu0 }
 0x4d5   : > { %v4656_v12 = vadd.f32 %v3207_v10, %v3085_v8  ;;  %v3209_v30 = vpop.f32.mrb[1].mxu0 }
 0x4d6   : > { %v4658_v13 = vadd.f32 %v3209_v30, %v3087_v9  ;;  %v3211_v15 = vpop.f32.mrb[2].mxu0 }
 0x4d7   : > { %v3378_v33 = vmax.f32 %v4656_v12, 0.0  ;;  %v3212_v21 = vpop.f32.mrb[3].mxu0 }
 0x4d8   : > { %v3379_v20 = vmax.f32 %v4658_v13, 0.0  ;;  %v5301_v21 = vld [vmem:[%s6063_s24 + $0x70] sm:$0xff]  }
 0x4d9   : > { %v3382_v18 = vpack.c.bf16 %v3378_v33, %v3378_v33  ;;  %4619 = vmatprep.subr.bf16.mxu1 %v5301_v21 }
 0x4da   : > { %v3383_v16 = vpack.c.bf16 %v3379_v20, %v3379_v20  ;;  %4620 = vmatpush3.bf16.msra.mxu1 %v5302_v37  ;;  %v3450_v20 = vld [vmem:[%s6064_s18] sm:$0x3] }
 0x4db   : > { %4621 = vmatprep.subr.bf16.mxu1 %v5303_v40 }
 0x4dc   : > { %3814 = vmatprep.mubr.bf16.mxu0 %v3383_v16  ;;  %v3775_v16 = vrot.slane %v3450_v20, %v5795_v36  ;;  %v3900_v36 = vld [vmem:[%s6065_s17] sm:$0x1] }
 0x4dd   : > { %3815 = vmatmul.mubr.bf16.vlgmr.msra.gmra.mrb[4].mxu0 %v3382_v18 }
 0x4de   : > { %3824 = vmatpush1.bf16.msra.mxu0 %v5241_v17  ;;  %4622 = vmatpush3.bf16.msra.mxu1 %v5304_v5  ;;  %v3779_v17 = vrot.slane %v3450_v20, %v5806_v39 }
 0x4df   : > { %3825 = vmatprep.subr.bf16.mxu0 %v5246_v19 }
 0x4e2   : > { %3826 = vmatpush1.bf16.msra.mxu0 %v5244_v35 }
 0x4e3   : > { %3827 = vmatprep.subr.bf16.mxu0 %v5249_v31 }
 0x4e6   : > { %3828 = vmatpush1.bf16.msra.mxu0 %v5247_v34 }
 0x4e7   : > { %3829 = vmatprep.subr.bf16.mxu0 %v5252_v27 }
 0x4ea   : > { %3830 = vmatpush1.bf16.msra.mxu0 %v5250_v60 }
 0x4eb   : > { %3831 = vmatprep.subr.bf16.mxu0 %v5255_v42 }
 0x4ee   : > { %3832 = vmatpush1.bf16.msra.mxu0 %v5253_v44 }
 0x4ef   : > { %3833 = vmatprep.subr.bf16.mxu0 %v5258_v14 }
 0x4f2   : > { %3834 = vmatpush1.bf16.msra.mxu0 %v5256_v46 }
 0x4f3   : > { %3835 = vmatprep.subr.bf16.mxu0 %v5261_v47 }
 0x4f6   : > { %3836 = vmatpush1.bf16.msra.mxu0 %v5259_v29 }
 0x4f7   : > { %3837 = vmatprep.subr.bf16.mxu0 %v5264_v48 }
 0x4fa   : > { %3838 = vmatpush1.bf16.msra.mxu0 %v5262_v49 }
 0x4fb   : > { %3839 = vmatprep.subr.bf16.mxu0 %v5267_v50 }
 0x4fe   : > { %3840 = vmatpush1.bf16.msra.mxu0 %v5265_v51 }
 0x4ff   : > { %3841 = vmatprep.subr.bf16.mxu0 %v5270_v52 }
 0x502   : > { %3842 = vmatpush1.bf16.msra.mxu0 %v5268_v53 }
 0x503   : > { %3843 = vmatprep.subr.bf16.mxu0 %v5273_v54 }
 0x506   : > { %3844 = vmatpush1.bf16.msra.mxu0 %v5271_v55 }
 0x507   : > { %3845 = vmatprep.subr.bf16.mxu0 %v5276_v56 }
 0x50a   : > { %3846 = vmatpush1.bf16.msra.mxu0 %v5274_v57 }
 0x50b   : > { %3847 = vmatprep.subr.bf16.mxu0 %v5279_v59 }
 0x50e   : > { %3848 = vmatpush1.bf16.msra.mxu0 %v5277_v61 }
 0x50f   : > { %3849 = vmatprep.subr.bf16.mxu0 %v5282_v62 }
 0x512   : > { %3850 = vmatpush1.bf16.msra.mxu0 %v5280_v38 }
 0x513   : > { %3851 = vmatprep.subr.bf16.mxu0 %v5285_v0 }
 0x516   : > { %3852 = vmatpush1.bf16.msra.mxu0 %v5283_v32 }
 0x517   : > { %3853 = vmatprep.subr.bf16.mxu0 %v5288_v1 }
 0x51a   : > { %3854 = vmatpush1.bf16.msra.mxu0 %v5286_v2 }
 0x542   : > { %v3371_v6 = vpop.f32.mrb[4].mxu1 }
 0x543   : > { %v4659_v7 = vadd.f32 %v3371_v6, %v3041_v3  ;;  %v3373_v8 = vpop.f32.mrb[5].mxu1 }
 0x544   : > { %v4660_v9 = vadd.f32 %v3373_v8, %v3045_v4  ;;  %v3375_v10 = vpop.f32.mrb[6].mxu1 }
 0x545   : > { %v3380_v12 = vmax.f32 %v4659_v7, 0.0  ;;  %v3376_v30 = vpop.f32.mrb[7].mxu1 }
 0x546   : > { %v3381_v13 = vmax.f32 %v4660_v9, 0.0 }
 0x547   : > { %v3384_v33 = vpack.c.bf16 %v3380_v12, %v3380_v12 }
 0x548   : > { %v3385_v15 = vpack.c.bf16 %v3381_v13, %v3381_v13 }
 0x54a   : > { %3855 = vmatprep.mubr.bf16.mxu0 %v3385_v15 }
 0x54b   : > { %3856 = vmatmul.mubr.bf16.vlgmr.msra.gmra.mrb[4].mxu0 %v3384_v33 }
 0x61e   : > { %v3857_v18 = vpop.f32.mrb[4].mxu0 }
 0x61f   : > { %v4661_v19 = vadd.f32 %v3857_v18, %v3775_v16  ;;  %v3859_v58 = vpop.f32.mrb[5].mxu0 }
 0x620   : > { %v4662_v22 = vadd.f32 %v3859_v58, %v3779_v17  ;;  %v3861_v24 = vpop.f32.mrb[6].mxu0 }
 0x621   : > { %v3864_v35 = vmax.f32 %v4661_v19, 0.0  ;;  %v3862_v31 = vpop.f32.mrb[7].mxu0 }
 0x622   : > { %v3865_v25 = vmax.f32 %v4662_v22, 0.0 }
 0x623   : > { %v3866_v34 = vpack.c.bf16 %v3864_v35, %v3864_v35 }
 0x624   : > { %v3867_v26 = vpack.c.bf16 %v3865_v25, %v3865_v25 }
 0x626   : > { %4029 = vmatprep.mubr.bf16.mxu1 %v3867_v26 }
 0x627   : > { %4030 = vmatmul.mubr.bf16.vlgmr.msra.gmra.mrb[8].mxu1 %v3866_v34 }
 0x6fa   : > { %v4623_v27 = vpop.f32.mrb[8].mxu1 }
 0x6fb   : > { %v4624_v28 = vpop.f32.mrb[9].mxu1 }
 0x6fc   : > { %v4625_v39 = vadd.f32 %v4624_v28, %v4623_v27  ;;  %v4626_v41 = vpop.f32.mrb[10].mxu1 }
 0x6fd   : > { %v4627_v60 = vpop.f32.mrb[11].mxu1 }
 0x6fe   : > { %v4032_v42 = vadd.f32 %v4625_v39, %v3900_v36 }
 0x700   : > { %4038 = vst.msk [vmem:[%s5750_s20] sm:$0x1] %vm4037_vm4, %v4032_v42 }
 0x701 PF: > { %s6066_s19 = sld [smem:[#allocation19_spill]]  ;;  %s4593_s22 = sshll.u32 %s5480_s1, 4 }
 0x702   : > { %s6067_s13 = sld [smem:[#allocation26_spill]]  ;;  %s4052_s11 = sshll.u32 %s5750_s20, 4  ;;  %s4053_s11 = int_to_ptr.vmem [resolvable:$true] %s4052_s11 }
 0x703   : > { %s4040_s12 = scalar_lea.sflag [#allocation5], %s535_s16  ;;  %s5390_s15 = scalar_lea.vmem %s4053_s11, 16 }
 0x704   : > { %p5391_p1 = scmp.ne.s32.totalorder %s4053_s11, %s5390_s15  ;;  %s5509_s26 = smov [#allocation9]  }
 0x705   : > { %s5394_s23 = sshll.u32 %s5509_s26, 4  ;;  %s5395_s23 = int_to_ptr.vmem [resolvable:$false] %s5394_s23 }
 0x706   : > { %s5396_s30 = scalar_lea.vmem %s5395_s23, 32  ;;  %p5397_p7 = scmp.lt.s32.totalorder %s4053_s11, %s5395_s23 }
 0x707   : > { %p6068_p4 = scmp.ne.s32.totalorder %s6066_s19, 0  ;;  %p5398_p8 = scmp.lt.s32.totalorder %s5396_s30, %s5390_s15 }
 0x708   : > { %s5960_s14 = scalar_lea.hbm %s6067_s13, %s4593_s22 }
 0x709   : > { %p5392_p5 = pnand %p5391_p1, %p6068_p4  ;;  %p5399_p11 = por %p5398_p8, %p5397_p7 }
 0x70b   : > { %p5393_p6 = pneg %p5392_p5 }
 0x70d   : > { %p5400_p12 = pnand %p5399_p11, %p5393_p6 }
 0x70f   : > { %5403 = shalt.err (!%p5400_p12)
}
 0x710   : > { %s5404_s1 = scalar_lea.hbm %s5960_s14, 16  ;;  %s5408_s18 = scalar_lea.hbm %s6067_s13, 32 }
 0x711   : > { %p5405_p3 = scmp.ne.s32.totalorder %s5960_s14, %s5404_s1  ;;  %p5409_p2 = scmp.lt.u32.totalorder %s5960_s14, %s6067_s13 }
 0x712   : > { %p5410_p10 = scmp.lt.u32.totalorder %s5408_s18, %s5404_s1  ;;  %p5412_p1 = scmp.lt.u32.totalorder %s5404_s1, %s5960_s14 }
 0x713   : > { %p5406_p9 = pnand %p5405_p3, %p6068_p4 }
 0x714   : > { %p5411_p13 = por %p5410_p10, %p5409_p2 }
 0x715   : > { %p5407_p0 = pneg %p5406_p9 }
 0x716   : > { %p5413_p5 = por %p5412_p1, %p5411_p13 }
 0x718   : > { %p5414_p6 = pnand %p5413_p5, %p5407_p0 }
 0x71a   : > { %5417 = shalt.err (!%p5414_p6)
}
 0x71b   : > { %4699 = dma.vmem_to_hbm [thread:$0]  (%p6068_p4), %s4053_s11, 16, %s5960_s14, %s4040_s12  }
 0x71c PF: > { %s6069_s17 = sld [smem:[#allocation17_spill]]  ;;  %s6070_s22 = sld [smem:[#allocation13_spill]] }
 0x71d   : > { %s6071_s28 = sld [smem:[#allocation21_spill]] }
 0x722   : > { %p4721_p7 = scmp.ge.s32.totalorder %s6069_s17, 2  ;;  %s4064_s25 = sand.u32 1, %s6070_s22  }
 0x723   : > { %p6072_p8 = scmp.ne.s32.totalorder %s6071_s28, 0  ;;  %s4065_s15 = scalar_lea.sflag [#allocation5], %s4064_s25 }
 0x725   : > { %p4712_p11 = pnand %p4721_p7, %p6072_p8 }
 0x727   : > { %5459 = dma.done.wait (!%p4712_p11), %s4065_s15, 16  }
 0x728   : > { %5461 = vsyncadd (!%p4712_p11), %s4065_s15, 4294967280  ;;  %s29_s18 = sadd.s32 1, %s6069_s17   ;;  %s6073_s26 = sld [smem:[#allocation14_spill]] }
 0x729   : > { %p26_p12 = scmp.ge.s32.totalorder %s29_s18, 6   ;;  %s6074_s30 = sld [smem:[#allocation22_spill]] }
 0x72a   : > { %s6075_s15 = sld [smem:[#allocation15_spill]]  ;;  %s6076_s1 = sld [smem:[#allocation16_spill]] }
 0x72b   : > { %s6077_s16 = sld [smem:[#allocation18_spill]]  ;;  %s6078_s17 = sld [smem:[#allocation20_spill]] }
 0x72c   : > { %s6079_s28 = smov %s5468_s29  ;;  %28 = sbr.rel (!%p26_p12) target bundleno = 12 (0xc), region = 135 }
 0x72e   : > { %s6080_s29 = smov %s6073_s26 }
 0x733   :  { %4069 = vsyncpa [#allocation4], 1 }
 0x734   :  { %4071 = vsyncpa [#allocation4 + $0x1], 1 }
 0x735   :  { %4072 = vsyncpa [#allocation7], 1 }
 0x736   :  { %4073 = vsyncpa [#allocation5], 1 }
 0x737   :  { %4075 = vsyncpa [#allocation5 + $0x1], 1 }

</bundles_post_ra>
